<compile_context>
chip_gen: v6e
topology: v6e:2x2x1
jax: 0.10.0
libtpu: 0.0.40
codegen_flags: <defaults>
</compile_context>

<pallas_src>
import functools
import math

import jax
import jax.numpy as jnp
from jax import lax
from jax.experimental import pallas as pl
from jax.experimental.pallas import tpu as pltpu


def _cdiv(a, b):
    return -(-a // b)


def _round_up(a, b):
    return _cdiv(a, b) * b


def _pick_tile(total, candidates):
    for c in candidates:
        if total % c == 0:
            return c
    return candidates[-1]


_TM = 128          # query-row tile (sublane axis)
_NEG = -1e30       # finite "-inf" so fully-masked rows never produce NaNs


# --------------------------- Pallas kernels -------------------------------- #

def _rgcn_proj_kernel(x_ref, acat_ref, xw_ref, wroot_ref, brgcn_ref,
                      wproj_ref, bproj_ref,
                      q_ref, kT_ref, v_ref, skip_ref, x1_acc, *, dout_pad):
    """Row tile of RGCNConv fused with the TransformerConv input projections.

    Grid = (row tiles, K tiles of the A_cat contraction).
      x1   = x @ W_root + b + A_cat @ xw           (xw = stack_r(X @ W_r), precomputed)
      proj = x1 @ [Wq*s | Wk | Wv | Wskip] + biases   (one fused MXU pass)
    """
    k = pl.program_id(1)

    @pl.when(k == 0)
    def _():
        x1_acc[...] = (jnp.dot(x_ref[...], wroot_ref[...],
                               preferred_element_type=jnp.float32)
                       + brgcn_ref[...])

    # K-tiled contraction against the precomputed relation transform.
    x1_acc[...] = x1_acc[...] + jnp.dot(
        acat_ref[...], xw_ref[...], preferred_element_type=jnp.float32)

    @pl.when(k == pl.num_programs(1) - 1)
    def _():
        x1 = x1_acc[...].astype(jnp.bfloat16)
        proj = (jnp.dot(x1, wproj_ref[...], preferred_element_type=jnp.float32)
                + bproj_ref[...])
        dp = dout_pad
        q_ref[...] = proj[:, 0 * dp:1 * dp].astype(jnp.bfloat16)
        kT_ref[...] = proj[:, 1 * dp:2 * dp].T.astype(jnp.bfloat16)   # pre-transposed K
        v_ref[...] = proj[:, 2 * dp:3 * dp].astype(jnp.bfloat16)
        skip_ref[...] = proj[:, 3 * dp:4 * dp].astype(jnp.bfloat16)


def _attn_kernel(meta_ref, q_ref, kT_ref, v_ref, adj_ref, skip_ref,
                 y_ref, stats_ref, m_sc, l_sc, acc_sc,
                 *, heads, d_pad, tm, dout_pad):
    """Edge-masked multi-head attention; flash-style online softmax over KV tiles.

    meta_ref (SMEM, scalar-prefetch): [i*num_kv_tiles + j] = tile-has-edges flag,
    last entry = number of real (unpadded) nodes for the BN-stat masking.
    """
    i = pl.program_id(0)
    j = pl.program_id(1)
    nkv = pl.num_programs(1)

    @pl.when(j == 0)
    def _():
        m_sc[...] = jnp.full(m_sc.shape, _NEG, jnp.float32)
        l_sc[...] = jnp.zeros_like(l_sc)
        acc_sc[...] = jnp.zeros_like(acc_sc)

    has_edges = meta_ref[i * nkv + j]

    @pl.when(has_edges > 0)                       # skip compute on empty adjacency tiles
    def _():
        mask = adj_ref[...] > 0.0                 # [TM, TKV]
        q = q_ref[...]                            # [TM,  dout_pad] bf16 (scale folded in)
        kT = kT_ref[...]                          # [dout_pad, TKV] bf16 (pre-transposed)
        v = v_ref[...]                            # [TKV, dout_pad] bf16
        corr_parts, pv_parts = [], []
        for h in range(heads):                    # static unroll
            lsl = slice(h * d_pad, (h + 1) * d_pad)
            s = jnp.dot(q[:, lsl], kT[lsl, :],
                        preferred_element_type=jnp.float32)          # [TM, TKV]
            s = jnp.where(mask, s, _NEG)
            m_prev = m_sc[h]                                          # [TM, 1]
            m_new = jnp.maximum(m_prev, jnp.max(s, axis=1, keepdims=True))
            corr = jnp.exp(m_prev - m_new)
            p = jnp.where(mask, jnp.exp(s - m_new), 0.0)
            l_sc[h] = corr * l_sc[h] + jnp.sum(p, axis=1, keepdims=True)
            m_sc[h] = m_new
            pv_parts.append(jnp.dot(p.astype(jnp.bfloat16), v[:, lsl],
                                    preferred_element_type=jnp.float32))
            corr_parts.append(jnp.broadcast_to(corr, (tm, d_pad)))
        rem = dout_pad - heads * d_pad
        if rem:
            corr_parts.append(jnp.zeros((tm, rem), jnp.float32))
            pv_parts.append(jnp.zeros((tm, rem), jnp.float32))
        # ONE full-width, lane-dense accumulator store per KV step.
        acc_sc[...] = (jnp.concatenate(corr_parts, axis=1) * acc_sc[...]
                       + jnp.concatenate(pv_parts, axis=1))

    @pl.when(j == nkv - 1)
    def _():
        inv_parts = []
        for h in range(heads):
            inv = pl.reciprocal(jnp.maximum(l_sc[h], 1e-20), approx=True)
            inv_parts.append(jnp.broadcast_to(inv, (tm, d_pad)))
        rem = dout_pad - heads * d_pad
        if rem:
            inv_parts.append(jnp.zeros((tm, rem), jnp.float32))
        y = (skip_ref[...].astype(jnp.float32)
             + acc_sc[...] * jnp.concatenate(inv_parts, axis=1))
        y_ref[...] = y                                               # single full-width store
        # Masked per-row-tile partial sums for the global BatchNorm statistics.
        n_real = meta_ref[pl.num_programs(0) * nkv]
        row_ids = i * tm + lax.broadcasted_iota(jnp.int32, (tm, 1), 0)
        valid = row_ids < n_real
        ssum = jnp.sum(jnp.where(valid, y, 0.0), axis=0, keepdims=True)
        ssq = jnp.sum(jnp.where(valid, y * y, 0.0), axis=0, keepdims=True)
        stats_ref[...] = jnp.concatenate(
            [ssum, ssq, jnp.zeros((6, dout_pad), jnp.float32)], axis=0)


def _bn_lrelu_kernel(y_ref, scale_ref, shift_ref, out_ref):
    """BatchNorm1d affine (precomputed scale/shift) + LeakyReLU(0.01)."""
    y = y_ref[...] * scale_ref[...] + shift_ref[...]
    out_ref[...] = jnp.where(y > 0.0, y, 0.01 * y)


# --------------------------- JAX-side glue --------------------------------- #

def _build_dense_adj(edge_index, edge_type, n_pad, num_relations):
    """Dense row-normalized adjacency laid out [i, r, j] -> flat [i, r*N + j] (bf16)."""
    src, dst = edge_index[0], edge_index[1]               # edge j -> i is (src=j, dst=i)
    a = jnp.zeros((n_pad, num_relations, n_pad), jnp.float32)
    a = a.at[dst, edge_type, src].add(1.0)
    deg = jnp.sum(a, axis=2, keepdims=True)
    a_norm = a / jnp.maximum(deg, 1.0)                    # 'mean' aggregation per relation
    a_cat = a_norm.reshape(n_pad, num_relations * n_pad).astype(jnp.bfloat16)
    adj = (jnp.sum(a, axis=1) > 0.0).astype(jnp.bfloat16)  # combined attention mask
    return a_cat, adj


class GNNPallas:
    """Pallas port of corect/model/GNN.py (gcn_conv='rgcn', use_graph_transformer=True)."""

    def __init__(self, g_dim, h1_dim, h2_dim, num_relations, num_modals, nheads, key):
        self.g_dim, self.h1_dim, self.h2_dim = g_dim, h1_dim, h2_dim
        self.num_relations, self.num_modals, self.nheads = num_relations, num_modals, nheads
        f32, bf16 = jnp.float32, jnp.bfloat16
        ks = jax.random.split(key, 10)
        s = 0.1
        # ---- reference-layout parameters -------------------------------------
        w_rel = (s * jax.random.normal(ks[0], (num_relations, g_dim, h1_dim))).astype(f32)
        w_root = (s * jax.random.normal(ks[1], (g_dim, h1_dim))).astype(f32)
        b_rgcn = (s * jax.random.normal(ks[2], (1, h1_dim))).astype(f32)
        wq = (s * jax.random.normal(ks[3], (nheads, h1_dim, h2_dim))).astype(f32)
        wk = (s * jax.random.normal(ks[4], (nheads, h1_dim, h2_dim))).astype(f32)
        wv = (s * jax.random.normal(ks[5], (nheads, h1_dim, h2_dim))).astype(f32)
        bq = (s * jax.random.normal(ks[6], (nheads, 1, h2_dim))).astype(f32)
        bk = (s * jax.random.normal(ks[7], (nheads, 1, h2_dim))).astype(f32)
        bv = (s * jax.random.normal(ks[8], (nheads, 1, h2_dim))).astype(f32)
        w_skip = (s * jax.random.normal(ks[9], (h1_dim, nheads * h2_dim))).astype(f32)
        b_skip = jnp.zeros((1, nheads * h2_dim), f32)
        gamma = jnp.ones((1, nheads * h2_dim), f32)        # BatchNorm1d affine init
        beta = jnp.zeros((1, nheads * h2_dim), f32)

        # ---- lane-dense TPU packing -------------------------------------------
        self.g_pad = _round_up(g_dim, 128)
        self.h1_pad = _round_up(h1_dim, 128)
        d_head = h2_dim
        self.d_pad = _round_up(max(d_head, _cdiv(128, nheads)), 16)  # per-head lane slice
        self.dout_pad = _round_up(nheads * self.d_pad, 128)          # packed output width
        self.col_idx = jnp.asarray(
            [h * self.d_pad + d for h in range(nheads) for d in range(d_head)], jnp.int32)
        scale = 1.0 / math.sqrt(d_head)

        self.w_rel_p = (jnp.zeros((num_relations, self.g_pad, self.h1_pad), f32)
                        .at[:, :g_dim, :h1_dim].set(w_rel)).astype(bf16)
        self.w_root_p = (jnp.zeros((self.g_pad, self.h1_pad), f32)
                         .at[:g_dim, :h1_dim].set(w_root)).astype(bf16)
        self.b_rgcn_p = jnp.zeros((1, self.h1_pad), f32).at[:, :h1_dim].set(b_rgcn)

        dpd, dpad = self.d_pad, self.dout_pad

        def pack_heads(w, mul=1.0):        # [H, h1_dim, d_head] -> [h1_pad, dout_pad]
            out = jnp.zeros((self.h1_pad, dpad), f32)
            for h in range(nheads):
                out = out.at[:h1_dim, h * dpd:h * dpd + d_head].set(w[h] * mul)
            return out

        def pack_heads_row(b, mul=1.0):    # [H, 1, d_head] -> [1, dout_pad]
            out = jnp.zeros((1, dpad), f32)
            for h in range(nheads):
                out = out.at[:, h * dpd:h * dpd + d_head].set(b[h] * mul)
            return out

        def pack_concat(w2):               # [h1_dim, H*d_head] -> [h1_pad, dout_pad]
            out = jnp.zeros((self.h1_pad, dpad), f32)
            for h in range(nheads):
                out = out.at[:h1_dim, h * dpd:h * dpd + d_head].set(
                    w2[:, h * d_head:(h + 1) * d_head])
            return out

        def pack_concat_row(b2):            # [1, H*d_head] -> [1, dout_pad]
            out = jnp.zeros((1, dpad), f32)
            for h in range(nheads):
                out = out.at[:, h * dpd:h * dpd + d_head].set(
                    b2[:, h * d_head:(h + 1) * d_head])
            return out

        # Fused projection weight/bias: [q*scale | k | v | skip] along lanes.
        self.w_proj_p = jnp.concatenate(
            [pack_heads(wq, scale), pack_heads(wk), pack_heads(wv), pack_concat(w_skip)],
            axis=1).astype(bf16)
        self.b_proj_p = jnp.concatenate(
            [pack_heads_row(bq, scale), pack_heads_row(bk), pack_heads_row(bv),
             pack_concat_row(b_skip)], axis=1)
        self.gamma_p = pack_concat_row(gamma)
        self.beta_p = pack_concat_row(beta)

    def __call__(self, node_features, node_type, edge_index, edge_type):
        del node_type                                      # unused by the reference forward
        n = node_features.shape[0]
        n_pad = _round_up(max(n, _TM), _TM)
        t_rows = n_pad // _TM
        tkv = _pick_tile(n_pad, (512, 256, 128))           # enlarged KV column tile
        t_kv = n_pad // tkv
        dp = self.dout_pad
        nrel = self.num_relations

        x = (jnp.zeros((n_pad, self.g_pad), jnp.float32)
             .at[:n, :self.g_dim].set(node_features.astype(jnp.float32))
             .astype(jnp.bfloat16))
        a_cat, adj = _build_dense_adj(edge_index, edge_type, n_pad, nrel)

        # Hoisted relation transform (computed ONCE, not per row tile): xw = stack_r(X@W_r)
        xw = jnp.einsum('ng,rgh->rnh', x, self.w_rel_p,
                        preferred_element_type=jnp.float32)
        xw = xw.reshape(nrel * n_pad, self.h1_pad).astype(jnp.bfloat16)

        rk = nrel * n_pad
        tk1 = _pick_tile(rk, (512, 256, 128))              # K tile of the A_cat contraction
        k_steps = rk // tk1

        # ---- kernel 1: RGCN (K-tiled) + fused Q/K^T/V/skip projections ---------
        qkv_bf16 = jax.ShapeDtypeStruct((n_pad, dp), jnp.bfloat16)
        q, kT, v, skip = pl.pallas_call(
            functools.partial(_rgcn_proj_kernel, dout_pad=dp),
            grid=(t_rows, k_steps),
            in_specs=[
                pl.BlockSpec((_TM, self.g_pad), lambda i, k: (i, 0)),          # x row tile
                pl.BlockSpec((_TM, tk1), lambda i, k: (i, k)),                 # A_cat tile
                pl.BlockSpec((tk1, self.h1_pad), lambda i, k: (k, 0)),         # xw tile
                pl.BlockSpec((self.g_pad, self.h1_pad), lambda i, k: (0, 0)),  # W_root
                pl.BlockSpec((1, self.h1_pad), lambda i, k: (0, 0)),           # b_rgcn
                pl.BlockSpec((self.h1_pad, 4 * dp), lambda i, k: (0, 0)),      # fused W
                pl.BlockSpec((1, 4 * dp), lambda i, k: (0, 0)),                # fused b
            ],
            out_specs=(
                pl.BlockSpec((_TM, dp), lambda i, k: (i, 0)),                  # q
                pl.BlockSpec((dp, _TM), lambda i, k: (0, i)),                  # k^T
                pl.BlockSpec((_TM, dp), lambda i, k: (i, 0)),                  # v
                pl.BlockSpec((_TM, dp), lambda i, k: (i, 0)),                  # skip
            ),
            out_shape=(qkv_bf16,
                       jax.ShapeDtypeStruct((dp, n_pad), jnp.bfloat16),
                       qkv_bf16, qkv_bf16),
            scratch_shapes=[pltpu.VMEM((_TM, self.h1_pad), jnp.float32)],
            compiler_params=pltpu.CompilerParams(
                dimension_semantics=("parallel", "arbitrary"),
                vmem_limit_bytes=48 * 1024 * 1024),
        )(x, a_cat, xw, self.w_root_p, self.b_rgcn_p, self.w_proj_p, self.b_proj_p)

        # per-(row-tile, kv-tile) edge presence (tile skipping) + n (BN-stat masking)
        blk = adj.reshape(t_rows, _TM, t_kv, tkv).astype(jnp.float32).sum(axis=(1, 3))
        meta = jnp.concatenate(
            [(blk > 0).astype(jnp.int32).reshape(-1), jnp.array([n], jnp.int32)])

        # ---- kernel 2: edge-masked multi-head attention (flash-style) ---------
        y, stats = pl.pallas_call(
            functools.partial(_attn_kernel, heads=self.nheads, d_pad=self.d_pad,
                              tm=_TM, dout_pad=dp),
            grid_spec=pltpu.PrefetchScalarGridSpec(
                num_scalar_prefetch=1,
                grid=(t_rows, t_kv),
                in_specs=[
                    pl.BlockSpec((_TM, dp), lambda i, j, meta: (i, 0)),     # q
                    pl.BlockSpec((dp, tkv), lambda i, j, meta: (0, j)),     # k^T
                    pl.BlockSpec((tkv, dp), lambda i, j, meta: (j, 0)),     # v
                    pl.BlockSpec((_TM, tkv), lambda i, j, meta: (i, j)),    # adjacency
                    pl.BlockSpec((_TM, dp), lambda i, j, meta: (i, 0)),     # skip (bf16)
                ],
                out_specs=[
                    pl.BlockSpec((_TM, dp), lambda i, j, meta: (i, 0)),     # y
                    pl.BlockSpec((8, dp), lambda i, j, meta: (i, 0)),       # BN partials
                ],
                scratch_shapes=[
                    pltpu.VMEM((self.nheads, _TM, 1), jnp.float32),         # running max
                    pltpu.VMEM((self.nheads, _TM, 1), jnp.float32),         # running denom
                    pltpu.VMEM((_TM, dp), jnp.float32),                     # accumulator
                ]),
            out_shape=(jax.ShapeDtypeStruct((n_pad, dp), jnp.float32),
                       jax.ShapeDtypeStruct((t_rows * 8, dp), jnp.float32)),
            compiler_params=pltpu.CompilerParams(
                dimension_semantics=("parallel", "arbitrary"),
                vmem_limit_bytes=48 * 1024 * 1024),
        )(meta, q, kT, v, adj, skip)

        # Finish the GLOBAL BatchNorm1d (training-mode) statistics on the tiny
        # per-row-tile partials emitted by the attention kernel (no re-read of y).
        stats = stats.reshape(t_rows, 8, dp)
        mean = jnp.sum(stats[:, 0], axis=0, keepdims=True) / n
        ex2 = jnp.sum(stats[:, 1], axis=0, keepdims=True) / n
        var = jnp.maximum(ex2 - mean * mean, 0.0)
        bn_scale = self.gamma_p * lax.rsqrt(var + 1e-5)
        bn_shift = self.beta_p - mean * bn_scale

        # ---- kernel 3: BN affine + LeakyReLU (elementwise, fat row tiles) ------
        tb = _pick_tile(n_pad, (512, 256, 128))
        out_pad = pl.pallas_call(
            _bn_lrelu_kernel,
            grid=(n_pad // tb,),
            in_specs=[
                pl.BlockSpec((tb, dp), lambda i: (i, 0)),
                pl.BlockSpec((1, dp), lambda i: (0, 0)),
                pl.BlockSpec((1, dp), lambda i: (0, 0)),
            ],
            out_specs=pl.BlockSpec((tb, dp), lambda i: (i, 0)),
            out_shape=jax.ShapeDtypeStruct((n_pad, dp), jnp.float32),
            compiler_params=pltpu.CompilerParams(dimension_semantics=("parallel",)),
        )(y, bn_scale, bn_shift)

        # un-pad: drop padded rows, gather the real per-head columns
        return jnp.take(out_pad[:n], self.col_idx, axis=1)


# ------------------------------- demo --------------------------------------- #

if __name__ == "__main__":
    N = 16            # nodes
    G_DIM = 16        # input node feature dim
    H1_DIM = 32       # RGCN output dim
    H2_DIM = 8        # per-head transformer dim
    NHEADS = 4        # graph_transformer_nheads (concat -> 32 output features)
    NUM_REL = 3
    NUM_MODALS = 2    # unused in forward (kept for signature parity)

    key = jax.random.PRNGKey(0)
    k_feat, k_param = jax.random.split(key)

    node_features = jax.random.normal(k_feat, (N, G_DIM), jnp.float32)
    node_type = jnp.zeros((N,), jnp.int32)          # accepted but unused (as in reference)

    # Deterministic, duplicate-free edge list: each node j sends to (j+d) % N
    offsets = (1, 3, 7)
    src = jnp.concatenate([jnp.arange(N, dtype=jnp.int32) for _ in offsets])
    dst = jnp.concatenate([(jnp.arange(N, dtype=jnp.int32) + d) % N for d in offsets])
    edge_index = jnp.stack([src, dst], axis=0)                       # [2, E], E = 48
    edge_type = (src + dst) % NUM_REL                                # [E]

    model = GNNPallas(G_DIM, H1_DIM, H2_DIM, NUM_REL, NUM_MODALS, NHEADS, k_param)
    out = model(node_features, node_type, edge_index, edge_type)
    out = jax.block_until_ready(out)

    assert out.shape == (N, H2_DIM * NHEADS)
    assert bool(jnp.all(jnp.isfinite(out)))
    # TODO(synk): BatchNorm1d uses training-mode batch statistics (a freshly-initialized
    # eval-mode BN with running_mean=0 / running_var=1 would be near-identity and hide
    # the normalization math).
    print("KERNEL_OK")
</pallas_src>

<mosaic_0001>
module attributes {stable_mosaic.version = 11 : i64} {
  func.func @_rgcn_proj_kernel(%arg0: i32, %arg1: i32, %arg2: memref<128x128xbf16, #tpu.memory_space<vmem>>, %arg3: memref<128x128xbf16, #tpu.memory_space<vmem>>, %arg4: memref<128x128xbf16, #tpu.memory_space<vmem>>, %arg5: memref<128x128xbf16, #tpu.memory_space<vmem>>, %arg6: memref<1x128xf32, #tpu.memory_space<vmem>>, %arg7: memref<128x512xbf16, #tpu.memory_space<vmem>>, %arg8: memref<1x512xf32, #tpu.memory_space<vmem>>, %arg9: memref<128x128xbf16, #tpu.memory_space<vmem>>, %arg10: memref<128x128xbf16, #tpu.memory_space<vmem>>, %arg11: memref<128x128xbf16, #tpu.memory_space<vmem>>, %arg12: memref<128x128xbf16, #tpu.memory_space<vmem>>, %arg13: memref<128x128xf32, #tpu.memory_space<vmem>>) attributes {dimension_semantics = [#tpu.dimension_semantics<parallel>, #tpu.dimension_semantics<arbitrary>], iteration_bounds = array<i64: 1, 3>, scalar_prefetch = 0 : i64, scratch_operands = 1 : i64, tpu.core_type = #tpu.core_type<tc>, window_params = [{transform_indices = @transform_0, window_bounds = array<i64: 128, 128>}, {transform_indices = @transform_1, window_bounds = array<i64: 128, 128>}, {transform_indices = @transform_2, window_bounds = array<i64: 128, 128>}, {pipeline_mode = #tpu.pipeline_mode<synchronous>, transform_indices = @transform_3, window_bounds = array<i64: 128, 128>}, {pipeline_mode = #tpu.pipeline_mode<synchronous>, transform_indices = @transform_4, window_bounds = array<i64: 1, 128>}, {pipeline_mode = #tpu.pipeline_mode<synchronous>, transform_indices = @transform_5, window_bounds = array<i64: 128, 512>}, {pipeline_mode = #tpu.pipeline_mode<synchronous>, transform_indices = @transform_6, window_bounds = array<i64: 1, 512>}, {transform_indices = @transform_7, window_bounds = array<i64: 128, 128>}, {transform_indices = @transform_8, window_bounds = array<i64: 128, 128>}, {transform_indices = @transform_9, window_bounds = array<i64: 128, 128>}, {transform_indices = @transform_10, window_bounds = array<i64: 128, 128>}]} {
    %c0_i32 = arith.constant 0 : i32
    %0 = arith.cmpi eq, %arg1, %c0_i32 : i32
    %1 = arith.extui %0 : i1 to i32
    %c0_i32_0 = arith.constant 0 : i32
    %2 = arith.cmpi ne, %1, %c0_i32_0 : i32
    scf.if %2 {
      %c0_9 = arith.constant 0 : index
      %c0_10 = arith.constant 0 : index
      %12 = vector.load %arg2[%c0_9, %c0_10] : memref<128x128xbf16, #tpu.memory_space<vmem>>, vector<128x128xbf16>
      %c0_11 = arith.constant 0 : index
      %c0_12 = arith.constant 0 : index
      %13 = vector.load %arg5[%c0_11, %c0_12] : memref<128x128xbf16, #tpu.memory_space<vmem>>, vector<128x128xbf16>
      %cst_13 = arith.constant dense<0.000000e+00> : vector<128x128xf32>
      %14 = tpu.matmul %12, %13, %cst_13 {dimension_numbers = #tpu.dot_dimension_numbers<[1], [0], [0], [1], [0, 0, 1, 1], [], []>} : vector<128x128xbf16>, vector<128x128xbf16>, vector<128x128xf32> -> vector<128x128xf32>
      %c0_14 = arith.constant 0 : index
      %c0_15 = arith.constant 0 : index
      %15 = vector.load %arg6[%c0_14, %c0_15] : memref<1x128xf32, #tpu.memory_space<vmem>>, vector<1x128xf32>
      %16 = vector.broadcast %15 : vector<1x128xf32> to vector<128x128xf32>
      %17 = arith.addf %14, %16 : vector<128x128xf32>
      %c0_16 = arith.constant 0 : index
      %c0_17 = arith.constant 0 : index
      %18 = vector.load %arg13[%c0_16, %c0_17] : memref<128x128xf32, #tpu.memory_space<vmem>>, vector<128x128xf32>
      tpu.vector_store %arg13[%c0_16, %c0_17], %17 {strides = array<i32>} : memref<128x128xf32, #tpu.memory_space<vmem>>, vector<128x128xf32>,
    } else {
    }
    %c0 = arith.constant 0 : index
    %c0_1 = arith.constant 0 : index
    %3 = vector.load %arg13[%c0, %c0_1] : memref<128x128xf32, #tpu.memory_space<vmem>>, vector<128x128xf32>
    %c0_2 = arith.constant 0 : index
    %c0_3 = arith.constant 0 : index
    %4 = vector.load %arg3[%c0_2, %c0_3] : memref<128x128xbf16, #tpu.memory_space<vmem>>, vector<128x128xbf16>
    %c0_4 = arith.constant 0 : index
    %c0_5 = arith.constant 0 : index
    %5 = vector.load %arg4[%c0_4, %c0_5] : memref<128x128xbf16, #tpu.memory_space<vmem>>, vector<128x128xbf16>
    %cst = arith.constant dense<0.000000e+00> : vector<128x128xf32>
    %6 = tpu.matmul %4, %5, %cst {dimension_numbers = #tpu.dot_dimension_numbers<[1], [0], [0], [1], [0, 0, 1, 1], [], []>} : vector<128x128xbf16>, vector<128x128xbf16>, vector<128x128xf32> -> vector<128x128xf32>
    %7 = arith.addf %3, %6 : vector<128x128xf32>
    %c0_6 = arith.constant 0 : index
    %c0_7 = arith.constant 0 : index
    %8 = vector.load %arg13[%c0_6, %c0_7] : memref<128x128xf32, #tpu.memory_space<vmem>>, vector<128x128xf32>
    tpu.vector_store %arg13[%c0_6, %c0_7], %7 {strides = array<i32>} : memref<128x128xf32, #tpu.memory_space<vmem>>, vector<128x128xf32>,
    %c2_i32 = arith.constant 2 : i32
    %9 = arith.cmpi eq, %arg1, %c2_i32 : i32
    %10 = arith.extui %9 : i1 to i32
    %c0_i32_8 = arith.constant 0 : i32
    %11 = arith.cmpi ne, %10, %c0_i32_8 : i32
    scf.if %11 {
      %c0_9 = arith.constant 0 : index
      %c0_10 = arith.constant 0 : index
      %12 = vector.load %arg13[%c0_9, %c0_10] : memref<128x128xf32, #tpu.memory_space<vmem>>, vector<128x128xf32>
      %13 = arith.truncf %12 : vector<128x128xf32> to vector<128x128xbf16>
      %c0_11 = arith.constant 0 : index
      %c0_12 = arith.constant 0 : index
      %14 = vector.load %arg7[%c0_11, %c0_12] : memref<128x512xbf16, #tpu.memory_space<vmem>>, vector<128x512xbf16>
      %cst_13 = arith.constant dense<0.000000e+00> : vector<128x512xf32>
      %15 = tpu.matmul %13, %14, %cst_13 {dimension_numbers = #tpu.dot_dimension_numbers<[1], [0], [0], [1], [0, 0, 1, 1], [], []>} : vector<128x128xbf16>, vector<128x512xbf16>, vector<128x512xf32> -> vector<128x512xf32>
      %c0_14 = arith.constant 0 : index
      %c0_15 = arith.constant 0 : index
      %16 = vector.load %arg8[%c0_14, %c0_15] : memref<1x512xf32, #tpu.memory_space<vmem>>, vector<1x512xf32>
      %17 = vector.broadcast %16 : vector<1x512xf32> to vector<128x512xf32>
      %18 = arith.addf %15, %17 : vector<128x512xf32>
      %19 = vector.extract_strided_slice %18 {offsets = [0, 0], sizes = [128, 128], strides = [1, 1]} : vector<128x512xf32> to vector<128x128xf32>
      %20 = arith.truncf %19 : vector<128x128xf32> to vector<128x128xbf16>
      %c0_16 = arith.constant 0 : index
      %c0_17 = arith.constant 0 : index
      %21 = vector.load %arg9[%c0_16, %c0_17] : memref<128x128xbf16, #tpu.memory_space<vmem>>, vector<128x128xbf16>
      tpu.vector_store %arg9[%c0_16, %c0_17], %20 {strides = array<i32>} : memref<128x128xbf16, #tpu.memory_space<vmem>>, vector<128x128xbf16>,
      %22 = vector.extract_strided_slice %18 {offsets = [0, 128], sizes = [128, 128], strides = [1, 1]} : vector<128x512xf32> to vector<128x128xf32>
      %23 = tpu.transpose %22, [1, 0] : vector<128x128xf32> -> vector<128x128xf32>
      %24 = arith.truncf %23 : vector<128x128xf32> to vector<128x128xbf16>
      %c0_18 = arith.constant 0 : index
      %c0_19 = arith.constant 0 : index
      %25 = vector.load %arg10[%c0_18, %c0_19] : memref<128x128xbf16, #tpu.memory_space<vmem>>, vector<128x128xbf16>
      tpu.vector_store %arg10[%c0_18, %c0_19], %24 {strides = array<i32>} : memref<128x128xbf16, #tpu.memory_space<vmem>>, vector<128x128xbf16>,
      %26 = vector.extract_strided_slice %18 {offsets = [0, 256], sizes = [128, 128], strides = [1, 1]} : vector<128x512xf32> to vector<128x128xf32>
      %27 = arith.truncf %26 : vector<128x128xf32> to vector<128x128xbf16>
      %c0_20 = arith.constant 0 : index
      %c0_21 = arith.constant 0 : index
      %28 = vector.load %arg11[%c0_20, %c0_21] : memref<128x128xbf16, #tpu.memory_space<vmem>>, vector<128x128xbf16>
      tpu.vector_store %arg11[%c0_20, %c0_21], %27 {strides = array<i32>} : memref<128x128xbf16, #tpu.memory_space<vmem>>, vector<128x128xbf16>,
      %29 = vector.extract_strided_slice %18 {offsets = [0, 384], sizes = [128, 128], strides = [1, 1]} : vector<128x512xf32> to vector<128x128xf32>
      %30 = arith.truncf %29 : vector<128x128xf32> to vector<128x128xbf16>
      %c0_22 = arith.constant 0 : index
      %c0_23 = arith.constant 0 : index
      %31 = vector.load %arg12[%c0_22, %c0_23] : memref<128x128xbf16, #tpu.memory_space<vmem>>, vector<128x128xbf16>
      tpu.vector_store %arg12[%c0_22, %c0_23], %30 {strides = array<i32>} : memref<128x128xbf16, #tpu.memory_space<vmem>>, vector<128x128xbf16>,
    } else {
    }
    return
  }
  func.func @transform_0(%arg0: i32, %arg1: i32) -> (i32, i32) {
    %c0_i32 = arith.constant 0 : i32
    %c0_i32_0 = arith.constant 0 : i32
    return %arg0, %c0_i32 : i32, i32
  }
  func.func @transform_1(%arg0: i32, %arg1: i32) -> (i32, i32) {
    %c0_i32 = arith.constant 0 : i32
    return %arg0, %arg1 : i32, i32
  }
  func.func @transform_2(%arg0: i32, %arg1: i32) -> (i32, i32) {
    %c0_i32 = arith.constant 0 : i32
    %c0_i32_0 = arith.constant 0 : i32
    return %arg1, %c0_i32 : i32, i32
  }
  func.func @transform_3(%arg0: i32, %arg1: i32) -> (i32, i32) {
    %c0_i32 = arith.constant 0 : i32
    %c0_i32_0 = arith.constant 0 : i32
    %c0_i32_1 = arith.constant 0 : i32
    return %c0_i32, %c0_i32_0 : i32, i32
  }
  func.func @transform_4(%arg0: i32, %arg1: i32) -> (i32, i32) {
    %c0_i32 = arith.constant 0 : i32
    %c0_i32_0 = arith.constant 0 : i32
    %c0_i32_1 = arith.constant 0 : i32
    return %c0_i32, %c0_i32_0 : i32, i32
  }
  func.func @transform_5(%arg0: i32, %arg1: i32) -> (i32, i32) {
    %c0_i32 = arith.constant 0 : i32
    %c0_i32_0 = arith.constant 0 : i32
    %c0_i32_1 = arith.constant 0 : i32
    return %c0_i32, %c0_i32_0 : i32, i32
  }
  func.func @transform_6(%arg0: i32, %arg1: i32) -> (i32, i32) {
    %c0_i32 = arith.constant 0 : i32
    %c0_i32_0 = arith.constant 0 : i32
    %c0_i32_1 = arith.constant 0 : i32
    return %c0_i32, %c0_i32_0 : i32, i32
  }
  func.func @transform_7(%arg0: i32, %arg1: i32) -> (i32, i32) {
    %c0_i32 = arith.constant 0 : i32
    %c0_i32_0 = arith.constant 0 : i32
    return %arg0, %c0_i32 : i32, i32
  }
  func.func @transform_8(%arg0: i32, %arg1: i32) -> (i32, i32) {
    %c0_i32 = arith.constant 0 : i32
    %c0_i32_0 = arith.constant 0 : i32
    return %c0_i32, %arg0 : i32, i32
  }
  func.func @transform_9(%arg0: i32, %arg1: i32) -> (i32, i32) {
    %c0_i32 = arith.constant 0 : i32
    %c0_i32_0 = arith.constant 0 : i32
    return %arg0, %c0_i32 : i32, i32
  }
  func.func @transform_10(%arg0: i32, %arg1: i32) -> (i32, i32) {
    %c0_i32 = arith.constant 0 : i32
    %c0_i32_0 = arith.constant 0 : i32
    return %arg0, %c0_i32 : i32, i32
  }
}

</mosaic_0001>

<bundles_post_ra>
// kernel: tpu_custom_call.1
= control target key start
LH: loop header
LB: loop body
LE: loop exit
PB: predicated region body
PF: predicated region fallthrough
CT: control target
= control target key end

     0   :  { %s3512_s0 = inlined_call_operand.hbm [shape: bf16[128,128], index: 0, kind: input, shape index: {}]   ;;  %s3513_s1 = inlined_call_operand.hbm [shape: bf16[128,384], index: 1, kind: input, shape index: {}]   ;;  %s3514_s2 = inlined_call_operand.hbm [shape: bf16[384,128], index: 2, kind: input, shape index: {}]   ;;  %s3515_s3 = inlined_call_operand.hbm [shape: bf16[128,128], index: 3, kind: input, shape index: {}]   ;;  %s3516_s4 = inlined_call_operand.vmem [shape: f32[1,128], index: 4, kind: input, shape index: {}]   ;;  %s3517_s5 = inlined_call_operand.hbm [shape: bf16[128,512], index: 5, kind: input, shape index: {}]   ;;  %s3518_s6 = inlined_call_operand.vmem [shape: f32[1,512], index: 6, kind: input, shape index: {}]   ;;  %s3519_s7 = inlined_call_operand.hbm [shape: bf16[128,128], index: 7, kind: output, shape index: {0}]   ;;  %s3520_s8 = inlined_call_operand.hbm [shape: bf16[128,128], index: 8, kind: output, shape index: {1}]   ;;  %s3521_s9 = inlined_call_operand.hbm [shape: bf16[128,128], index: 9, kind: output, shape index: {2}]   ;;  %s3522_s10 = inlined_call_operand.hbm [shape: bf16[128,128], index: 10, kind: output, shape index: {3}]  }
   0x1   :  { %3530 = sst [smem:[#allocation27_spill]] %s3512_s0 }
   0x2   :  { %3531 = sst [smem:[#allocation28_spill]] %s3513_s1 }
   0x3   :  { %3532 = sst [smem:[#allocation29_spill]] %s3515_s3 }
   0x4   :  { %3533 = sst [smem:[#allocation30_spill]] %s3519_s7 }
   0x5   :  { %3534 = sst [smem:[#allocation31_spill]] %s3520_s8 }
   0x6   :  { %3535 = sst [smem:[#allocation32_spill]] %s3521_s9 }
   0x7   :  { %3536 = sst [smem:[#allocation33_spill]] %s3522_s10 }
   0x8   :  { %16 = vsyncpa [#allocation4], 0 }
   0x9   :  { %17 = vsyncpa [#allocation7], 0 }
   0xa   :  { %19 = vsyncpa [#allocation7 + $0x1], 0 }
   0xb   :  { %20 = vsyncpa [#allocation10], 0 }
   0xc   :  { %21 = vsyncpa [#allocation5], 0 }
   0xd   :  { %22 = vsyncpa [#allocation14], 0 }
   0xe   :  { %23 = vsyncpa [#allocation17], 0  ;;  %s3170_s13 = smov 0   ;;  %s3172_s14 = smov 0  }
   0xf   :  { %s3174_s15 = smov 0   ;;  %s3176_s16 = smov 0  }
  0x10   :  { %s3178_s17 = smov 0   ;;  %s3180_s18 = smov 0  }
  0x11 LB: > { %3537 = sst [smem:[#allocation24_spill]] %s3084_s15  ;;  %s3199_s19 = sadd.s32 4294967295, %s3096_s18   ;;  %s3096_s18 = sphi %s3180_s18, %s29_s18   ;;  %s3092_s17 = sphi %s3178_s17, %s3564_s17   ;;  %s3088_s16 = sphi %s3176_s16, %s3563_s16   ;;  %s3084_s15 = sphi %s3174_s15, %s3559_s15   ;;  %s3080_s14 = sphi %s3172_s14, %s3562_s14   ;;  %s3076_s13 = sphi %s3170_s13, %s3561_s13  }
  0x12   : > { %p83_p0 = scmp.ne.s32.totalorder %s3084_s15, %s3080_s14  ;;  %p84_p1 = scmp.eq.s32.totalorder %s3096_s18, 0 }
  0x13   : > { %p89_p2 = scmp.ne.s32.totalorder %s3080_s14, %s3076_s13  ;;  %p3523_p3 = scmp.eq.s32.totalorder %s3199_s19, 0 }
  0x14   : > { %p85_p4 = por %p84_p1, %p83_p0  ;;  %p2051_p5 = scmp.ge.s32.totalorder %s3096_s18, 1 }
  0x15   : > { %p3210_p6 = por %p3523_p3, %p89_p2  ;;  %p314_p7 = scmp.lt.s32.totalorder %s3096_s18, 4 }
  0x16   : > { %s3098_s23 = smov [#allocation9]   ;;  %p2641_p10 = scmp.lt.s32.totalorder %s3096_s18, 3 }
  0x17   : > { %p3215_p8 = pnand %p2051_p5, %p314_p7  ;;  %s342_s24 = sshll.u32 %s3098_s23, 4  ;;  %s343_s24 = int_to_ptr.vmem [resolvable:$true] %s342_s24 }
  0x18   : > { %p3228_p12 = pnand %p2641_p10, %p85_p4  ;;  %s38_s27 = sadd.s32 1, %s3092_s17 }
  0x19   : > { %p2621_p9 = pneg %p3215_p8  ;;  %s2807_s28 = scalar_lea.vmem %s343_s24, 1024 }
  0x1a   : > { %p2808_p0 = scmp.ne.s32.totalorder %s343_s24, %s2807_s28  ;;  %p2815_p5 = scmp.lt.s32.totalorder %s343_s24, %s343_s24 }
  0x1b   : > { %p3224_p11 = pnand %p2621_p9, %p3523_p3  ;;  %p2816_p7 = scmp.lt.s32.totalorder %s2807_s28, %s2807_s28 }
  0x1d   : > { %p2798_p13 = pneg %p3224_p11  ;;  %p2817_p9 = por %p2816_p7, %p2815_p5 }
  0x1f   : > { %p2810_p1 = pnand %p2808_p0, %p2798_p13 }
  0x21   : > { %p2811_p2 = pneg %p2810_p1 }
  0x23   : > { %p2818_p3 = pnand %p2817_p9, %p2811_p2 }
  0x25   : > { %2821 = shalt.err (!%p2818_p3)
}
  0x26   : > { %s3524_s29 = smov 64   ;;  %s3526_s30 = smov 4  }
  0x27   : > { %s3542_s3 = sld [smem:[#allocation29_spill]]  ;;  %p39_p4 = scmp.ge.s32.totalorder %s38_s27, 3 }
  0x28   : > { %s375_s13 = sand.u32 1, %s3096_s18   ;;  %s377_s23 = sand.u32 1, %s3084_s15  }
  0x29   : > { %s3566_s27 = smov (%p39_p4, %s38_s27), 0  ;;  %s3250_s28 = sshll.u32 %s377_s23, 6 }
  0x2a   : > { %3543 = sst [smem:[#allocation25_spill]] %s3566_s27  ;;  %s72_s20 = ssub.s32 %s3092_s17, %s3566_s27 }
  0x2b   : > { %p74_p3 = scmp.eq.s32.totalorder %s72_s20, 0  ;;  %s2057_s10 = sshll.u32 %s3092_s17, 6 }
  0x2c   : > { %s3544_s1 = sld [smem:[#allocation28_spill]]  ;;  %s379_s11 = scalar_lea.vmem [#allocation6], %s3250_s28 }
  0x2d   : > { %2627 = dma.hbm_to_vmem [thread:$0]  (!%p3224_p11), %s3542_s3, 1024, %s343_s24, [#allocation10], %s3524_s29, %s3524_s29, %s3526_s30  }
  0x2e   : > { %s388_s12 = sshll.u32 %s379_s11, 4  ;;  %s3545_s24 = sadd.s32 1, %s3084_s15  ;;  %s389_s12 = int_to_ptr.vmem [resolvable:$true] %s388_s12 }
  0x2f   : > { %s3262_s29 = scalar_select %p74_p3, %s3084_s15, %s3545_s24  }
  0x30   : > { %s3264_s30 = scalar_lea.sflag [#allocation7], %s375_s13  ;;  %p2824_p10 = pneg %p3228_p12 }
  0x31   : > { %3546 = sst [smem:[#allocation26_spill]] %s3262_s29  ;;  %s2835_s23 = scalar_lea.vmem %s389_s12, 1024 }
  0x32   : > { %s387_s8 = scalar_lea.hbm %s3544_s1, %s2057_s10  ;;  %p2836_p0 = scmp.ne.s32.totalorder %s389_s12, %s2835_s23 }
  0x33   : > { %s3101_s20 = smov [#allocation6]  }
  0x34   : > { %p2838_p1 = pnand %p2836_p0, %p2824_p10  ;;  %s2840_s3 = sshll.u32 %s3101_s20, 4  ;;  %s2841_s3 = int_to_ptr.vmem [resolvable:$false] %s2840_s3 }
  0x35   : > { %s2842_s7 = scalar_lea.vmem %s2841_s3, 2048  ;;  %p2843_p5 = scmp.lt.s32.totalorder %s389_s12, %s2841_s3 }
  0x36   : > { %p2839_p2 = pneg %p2838_p1  ;;  %p2844_p7 = scmp.lt.s32.totalorder %s2842_s7, %s2835_s23 }
  0x38   : > { %p2845_p9 = por %p2844_p7, %p2843_p5 }
  0x3a   : > { %p2846_p4 = pnand %p2845_p9, %p2839_p2 }
  0x3c   : > { %2849 = shalt.err (!%p2846_p4)
}
  0x3d   : > { %s3102_s9 = smov 192   ;;  %s3547_s10 = smov 4  }
  0x3e   : > { %s3548_s13 = smov 64   ;;  %s3103_s11 = smov [#allocation3]  }
  0x3f   : > { %2634 = dma.hbm_to_vmem [thread:$0]  (!%p3228_p12), %s387_s8, 1024, %s389_s12, %s3264_s30, %s3102_s9, %s3548_s13, %s3547_s10  }
  0x40   : > { %s329_s24 = sshll.u32 %s3103_s11, 4  ;;  %s330_s24 = int_to_ptr.vmem [resolvable:$true] %s329_s24 }
  0x41   : > { %s2861_s1 = scalar_lea.vmem %s330_s24, 1024  ;;  %p2869_p5 = scmp.lt.s32.totalorder %s330_s24, %s330_s24 }
  0x42   : > { %p2862_p3 = scmp.ne.s32.totalorder %s330_s24, %s2861_s1  ;;  %p2870_p2 = scmp.lt.s32.totalorder %s2861_s1, %s2861_s1 }
  0x44   : > { %p2864_p0 = pnand %p2862_p3, %p2798_p13  ;;  %p2871_p7 = por %p2870_p2, %p2869_p5 }
  0x46   : > { %p2865_p1 = pneg %p2864_p0 }
  0x48   : > { %p2872_p9 = pnand %p2871_p7, %p2865_p1 }
  0x4a   : > { %2875 = shalt.err (!%p2872_p9)
}
  0x4b   : > { %s3549_s0 = sld [smem:[#allocation27_spill]]  ;;  %s3104_s12 = smov [#allocation11]  }
  0x4c   : > { %s358_s23 = sshll.u32 %s3104_s12, 4  ;;  %s359_s23 = int_to_ptr.vmem [resolvable:$true] %s358_s23 }
  0x4d   : > { %s2887_s20 = scalar_lea.vmem %s359_s23, 4096  ;;  %p2895_p1 = scmp.lt.s32.totalorder %s359_s23, %s359_s23 }
  0x4e   : > { %p2888_p4 = scmp.ne.s32.totalorder %s359_s23, %s2887_s20  ;;  %p2896_p5 = scmp.lt.s32.totalorder %s2887_s20, %s2887_s20 }
  0x50   : > { %p2890_p3 = pnand %p2888_p4, %p2798_p13  ;;  %p2897_p2 = por %p2896_p5, %p2895_p1 }
  0x51   : > { %2624 = dma.hbm_to_vmem [thread:$0]  (!%p3224_p11), %s3549_s0, 1024, %s330_s24, [#allocation4], %s3548_s13, %s3548_s13, %s3547_s10  }
  0x52   : > { %p2891_p0 = pneg %p2890_p3 }
  0x54   : > { %p2898_p7 = pnand %p2897_p2, %p2891_p0 }
  0x56   : > { %2901 = shalt.err (!%p2898_p7)
}
  0x57   : > { %s3105_s1 = smov 256   ;;  %s3106_s7 = smov 16  }
  0x58   : > { %2630 = dma.hbm_to_vmem [thread:$0]  (!%p3224_p11), %s3517_s5, 4096, %s359_s23, [#allocation10], %s3105_s1, %s3105_s1, %s3106_s7  }
  0x59   : > { %s2208_s24 = sshll.u32 %s3092_s17, 10  ;;  %s402_s20 = scalar_lea.vmem [#allocation8], %s3250_s28 }
  0x5a   : > { %s408_s12 = scalar_lea.hbm %s3514_s2, %s2208_s24  ;;  %s409_s0 = sshll.u32 %s402_s20, 4  ;;  %s410_s0 = int_to_ptr.vmem [resolvable:$true] %s409_s0 }
  0x5b   : > { %s2915_s27 = scalar_lea.vmem %s410_s0, 1024  ;;  %s3107_s29 = smov [#allocation8]  }
  0x5c   : > { %p2916_p13 = scmp.ne.s32.totalorder %s410_s0, %s2915_s27  ;;  %s2920_s25 = sshll.u32 %s3107_s29, 4  ;;  %s2921_s25 = int_to_ptr.vmem [resolvable:$false] %s2920_s25 }
  0x5d   : > { %s2922_s15 = scalar_lea.vmem %s2921_s25, 2048  ;;  %p2923_p3 = scmp.lt.s32.totalorder %s410_s0, %s2921_s25 }
  0x5e   : > { %p2918_p9 = pnand %p2916_p13, %p2824_p10  ;;  %p2924_p11 = scmp.lt.s32.totalorder %s2922_s15, %s2915_s27 }
  0x60   : > { %p2919_p4 = pneg %p2918_p9  ;;  %p2925_p0 = por %p2924_p11, %p2923_p3 }
  0x62   : > { %p2926_p1 = pnand %p2925_p0, %p2919_p4 }
  0x64   : > { %2929 = shalt.err (!%p2926_p1)
}
  0x65   : > { %2637 = dma.hbm_to_vmem [thread:$0]  (!%p3228_p12), %s408_s12, 1024, %s410_s0, %s3264_s30, %s3548_s13, %s3548_s13, %s3547_s10  }
  0x66   : > { %421 = sbr.rel (%p3215_p8) target bundleno = 1087 (0x43f), region = 48  ;;  %p3550_p10 = scmp.eq.s32.totalorder (!%p3215_p8), %s3199_s19, 0 }
  0x6b   : > { %3051 = dma.done.wait (%p3550_p10), [#allocation4], 1024   ;;  %p3551_p5 = pmov %p3550_p10 }
  0x6c   : > { %s427_s15 = sand.u32 1, %s3199_s19   ;;  %s429_s27 = sand.u32 1, %s3080_s14  }
  0x6d   : > { %3053 = vsyncadd (%p3551_p5), [#allocation4], 4294966272  ;;  %s2063_s26 = sshll.u32 %s429_s27, 6  ;;  %s428_s29 = scalar_lea.sflag [#allocation7], %s427_s15 }
  0x6e   : > { %s3317_s28 = scalar_lea.vmem [#allocation6], %s2063_s26 }
  0x6f   : > { %3055 = dma.done.wait (%p3210_p6), %s428_s29, 2048  }
  0x70   : > { %3057 = vsyncadd (%p3210_p6), %s428_s29, 4294965248  ;;  %s3323_s0 = scalar_lea.vmem [#allocation8], %s2063_s26  ;;  %p3552_p8 = pmov %p3551_p5 }
  0x71   : > { %p3553_p12 = pmov %p3551_p5 }
  0x72   : > { %3059 = dma.done.wait (%p3552_p8), [#allocation10], 5120  }
  0x73   : > { %3061 = vsyncadd (%p3553_p12), [#allocation10], 4294962176  ;;  %p2067_p2 = scmp.ne.s32.totalorder %s3088_s16, 0 }
  0x75   : > { %495 = sbr.rel (%p2067_p2) target bundleno = 365 (0x16d), region = 72 }
  0x7a   : > { %v2716_v0 = vld [vmem:[#allocation9 + $0x38] sm:$0xff]   ;;  %v2717_v1 = vld [vmem:[#allocation9 + $0x30] sm:$0xff]   ;;  %v2718_v2 = vld [vmem:[#allocation9 + $0x28] sm:$0xff]  }
  0x7b   : > { %2493 = vmatprep.subr.bf16.mxu0 %v2716_v0  ;;  %2557 = vmatprep.subr.bf16.mxu1 %v2716_v0  ;;  %v2719_v3 = vld [vmem:[#allocation9 + $0x20] sm:$0xff]   ;;  %v2720_v6 = vld [vmem:[#allocation9 + $0x18] sm:$0xff]   ;;  %v2721_v7 = vld [vmem:[#allocation9 + $0x10] sm:$0xff]  }
  0x7c   : > { %2494 = vmatpush3.bf16.msra.mxu0 %v2716_v0  ;;  %2565 = vmatpush3.bf16.msra.mxu1 %v2716_v0  ;;  %v2724_v4 = vld [vmem:[#allocation3] sm:$0xff]   ;;  %v2722_v8 = vld [vmem:[#allocation9 + $0x8] sm:$0xff]   ;;  %v2728_v12 = vld [vmem:[#allocation3 + $0x10] sm:$0xff]  }
  0x7d   : > { %2495 = vmatprep.subr.bf16.mxu0 %v2717_v1  ;;  %2558 = vmatprep.subr.bf16.mxu1 %v2717_v1  ;;  %v2725_v5 = vld [vmem:[#allocation3 + $0x20] sm:$0xff]   ;;  %v2726_v10 = vld [vmem:[#allocation3 + $0x8] sm:$0xff]   ;;  %v2729_v13 = vld [vmem:[#allocation3 + $0x30] sm:$0xff]  }
  0x7e   : > { %2509 = vmatprep.mubr.bf16.mxu0 %v2724_v4  ;;  %2517 = vmatprep.mubr.bf16.mxu1 %v2725_v5  ;;  %v2723_v9 = vld [vmem:[#allocation9] sm:$0xff]   ;;  %v2727_v11 = vld [vmem:[#allocation3 + $0x28] sm:$0xff]   ;;  %v2730_v14 = vld [vmem:[#allocation3 + $0x18] sm:$0xff]  }
  0x7f   : > { %v2731_v15 = vld [vmem:[#allocation3 + $0x38] sm:$0xff]   ;;  %v2068_v16 = vld [vmem:[%s3516_s4] ss:$0 sm:$0xff] }
  0x80   : > { %2496 = vmatpush3.bf16.msra.mxu0 %v2717_v1  ;;  %2566 = vmatpush3.bf16.msra.mxu1 %v2717_v1 }
  0x81   : > { %2497 = vmatprep.subr.bf16.mxu0 %v2718_v2  ;;  %2559 = vmatprep.subr.bf16.mxu1 %v2718_v2 }
  0x84   : > { %2498 = vmatpush3.bf16.msra.mxu0 %v2718_v2  ;;  %2567 = vmatpush3.bf16.msra.mxu1 %v2718_v2 }
  0x85   : > { %2499 = vmatprep.subr.bf16.mxu0 %v2719_v3  ;;  %2560 = vmatprep.subr.bf16.mxu1 %v2719_v3 }
  0x88   : > { %2500 = vmatpush3.bf16.msra.mxu0 %v2719_v3  ;;  %2568 = vmatpush3.bf16.msra.mxu1 %v2719_v3 }
  0x89   : > { %2501 = vmatprep.subr.bf16.mxu0 %v2720_v6  ;;  %2561 = vmatprep.subr.bf16.mxu1 %v2720_v6 }
  0x8c   : > { %2502 = vmatpush3.bf16.msra.mxu0 %v2720_v6  ;;  %2569 = vmatpush3.bf16.msra.mxu1 %v2720_v6 }
  0x8d   : > { %2503 = vmatprep.subr.bf16.mxu0 %v2721_v7  ;;  %2562 = vmatprep.subr.bf16.mxu1 %v2721_v7 }
  0x90   : > { %2504 = vmatpush3.bf16.msra.mxu0 %v2721_v7  ;;  %2570 = vmatpush3.bf16.msra.mxu1 %v2721_v7 }
  0x91   : > { %2505 = vmatprep.subr.bf16.mxu0 %v2722_v8  ;;  %2563 = vmatprep.subr.bf16.mxu1 %v2722_v8 }
  0x94   : > { %2506 = vmatpush3.bf16.msra.mxu0 %v2722_v8  ;;  %2571 = vmatpush3.bf16.msra.mxu1 %v2722_v8 }
  0x95   : > { %2507 = vmatprep.subr.bf16.mxu0 %v2723_v9  ;;  %2564 = vmatprep.subr.bf16.mxu1 %v2723_v9 }
  0x98   : > { %2508 = vmatpush3.bf16.msra.mxu0 %v2723_v9  ;;  %2572 = vmatpush3.bf16.msra.mxu1 %v2723_v9 }
  0x9b   : > { %2510 = vmatmul.mubr.bf16.vlgmr.msra.gmra.mxu0 %v2726_v10  ;;  %2518 = vmatmul.mubr.bf16.vlgmr.msra.gmra.mxu1 %v2727_v11 }
  0x9c   : > { %2513 = vmatprep.mubr.bf16.mxu0 %v2728_v12  ;;  %2521 = vmatprep.mubr.bf16.mxu1 %v2729_v13 }
  0xa3   : > { %2514 = vmatmul.mubr.bf16.gmra.mxu0 %v2730_v14  ;;  %2522 = vmatmul.mubr.bf16.gmra.mxu1 %v2731_v15 }
 0x15b   : > { %v2511_v17 = vpop.f32.mrf.mxu0  ;;  %v2519_v18 = vpop.f32.mrf.mxu1 }
 0x15c   : > { %v674_v19 = vadd.f32 %v2511_v17, %v2068_v16  ;;  %v706_v20 = vadd.f32 %v2519_v18, %v2068_v16 }
 0x15d   : > { %v665_v21 = vpop.f32.mrf.mxu0  ;;  %v697_v22 = vpop.f32.mrf.mxu1 }
 0x15e   : > { %730 = vst [vmem:[#allocation2 + $0x58] sm:$0xff] %v674_v19  ;;  %738 = vst [vmem:[#allocation2 + $0x10] sm:$0xff] %v706_v20  ;;  %v666_v23 = vadd.f32 %v2068_v16, %v665_v21  ;;  %v698_v24 = vadd.f32 %v2068_v16, %v697_v22 }
 0x15f   : > { %v2512_v25 = vpop.f32.mrf.mxu0  ;;  %v2520_v26 = vpop.f32.mrf.mxu1 }
 0x160   : > { %728 = vst [vmem:[#allocation2 + $0x30] sm:$0xff] %v666_v23  ;;  %736 = vst [vmem:[#allocation2 + $0x40] sm:$0xff] %v698_v24  ;;  %v677_v27 = vadd.f32 %v2512_v25, %v2068_v16  ;;  %v709_v28 = vadd.f32 %v2520_v26, %v2068_v16 }
 0x161   : > { %v668_v29 = vpop.f32.mrf.mxu0  ;;  %v700_v30 = vpop.f32.mrf.mxu1 }
 0x162   : > { %731 = vst [vmem:[#allocation2 + $0x18] sm:$0xff] %v677_v27  ;;  %739 = vst [vmem:[#allocation2 + $0x38] sm:$0xff] %v709_v28  ;;  %v669_v31 = vadd.f32 %v2068_v16, %v668_v29  ;;  %v701_v32 = vadd.f32 %v2068_v16, %v700_v30 }
 0x163   : > { %v2515_v33 = vpop.f32.mrf.mxu0  ;;  %v2523_v34 = vpop.f32.mrf.mxu1 }
 0x164   : > { %729 = vst [vmem:[#allocation2] sm:$0xff] %v669_v31  ;;  %737 = vst [vmem:[#allocation2 + $0x20] sm:$0xff] %v701_v32  ;;  %v690_v35 = vadd.f32 %v2515_v33, %v2068_v16  ;;  %v722_v36 = vadd.f32 %v2523_v34, %v2068_v16 }
 0x165   : > { %v681_v37 = vpop.f32.mrf.mxu0  ;;  %v713_v38 = vpop.f32.mrf.mxu1 }
 0x166   : > { %734 = vst [vmem:[#allocation2 + $0x8] sm:$0xff] %v690_v35  ;;  %742 = vst [vmem:[#allocation2 + $0x78] sm:$0xff] %v722_v36  ;;  %v682_v39 = vadd.f32 %v2068_v16, %v681_v37  ;;  %v714_v40 = vadd.f32 %v2068_v16, %v713_v38 }
 0x167   : > { %v2516_v41 = vpop.f32.mrf.mxu0  ;;  %v2524_v42 = vpop.f32.mrf.mxu1 }
 0x168   : > { %732 = vst [vmem:[#allocation2 + $0x50] sm:$0xff] %v682_v39  ;;  %740 = vst [vmem:[#allocation2 + $0x60] sm:$0xff] %v714_v40  ;;  %v693_v43 = vadd.f32 %v2516_v41, %v2068_v16  ;;  %v725_v44 = vadd.f32 %v2524_v42, %v2068_v16 }
 0x169   : > { %v684_v45 = vpop.f32.mrf.mxu0  ;;  %v716_v46 = vpop.f32.mrf.mxu1 }
 0x16a   : > { %735 = vst [vmem:[#allocation2 + $0x48] sm:$0xff] %v693_v43  ;;  %743 = vst [vmem:[#allocation2 + $0x28] sm:$0xff] %v725_v44  ;;  %v685_v47 = vadd.f32 %v2068_v16, %v684_v45  ;;  %v717_v48 = vadd.f32 %v2068_v16, %v716_v46 }
 0x16c   : > { %733 = vst [vmem:[#allocation2 + $0x68] sm:$0xff] %v685_v47  ;;  %741 = vst [vmem:[#allocation2 + $0x70] sm:$0xff] %v717_v48 }
 0x16d PF: > { %v2732_v49 = vld [vmem:[%s3323_s0 + $0x38] sm:$0xff]   ;;  %v2733_v50 = vld [vmem:[%s3323_s0 + $0x30] sm:$0xff]   ;;  %v2734_v51 = vld [vmem:[%s3323_s0 + $0x28] sm:$0xff]   ;;  %p2101_p6 = scmp.ne.s32.totalorder %s3088_s16, 2 }
 0x16e   : > { %2525 = vmatprep.subr.bf16.mxu0 %v2732_v49  ;;  %2573 = vmatprep.subr.bf16.mxu1 %v2732_v49  ;;  %v2735_v52 = vld [vmem:[%s3323_s0 + $0x20] sm:$0xff]   ;;  %v2736_v55 = vld [vmem:[%s3323_s0 + $0x18] sm:$0xff]   ;;  %v2737_v56 = vld [vmem:[%s3323_s0 + $0x10] sm:$0xff]  }
 0x16f   : > { %2526 = vmatpush3.bf16.msra.mxu0 %v2732_v49  ;;  %2581 = vmatpush3.bf16.msra.mxu1 %v2732_v49  ;;  %v2740_v53 = vld [vmem:[%s3317_s28] sm:$0xff]   ;;  %v2738_v57 = vld [vmem:[%s3323_s0 + $0x8] sm:$0xff]   ;;  %v2744_v61 = vld [vmem:[%s3317_s28 + $0x10] sm:$0xff]  }
 0x170   : > { %2527 = vmatprep.subr.bf16.mxu0 %v2733_v50  ;;  %2574 = vmatprep.subr.bf16.mxu1 %v2733_v50  ;;  %v2741_v54 = vld [vmem:[%s3317_s28 + $0x20] sm:$0xff]   ;;  %v2742_v59 = vld [vmem:[%s3317_s28 + $0x8] sm:$0xff]   ;;  %v2745_v62 = vld [vmem:[%s3317_s28 + $0x30] sm:$0xff]  }
 0x171   : > { %2541 = vmatprep.mubr.bf16.mxu0 %v2740_v53  ;;  %2549 = vmatprep.mubr.bf16.mxu1 %v2741_v54  ;;  %v2739_v58 = vld [vmem:[%s3323_s0] sm:$0xff]   ;;  %v2743_v60 = vld [vmem:[%s3317_s28 + $0x28] sm:$0xff]   ;;  %v2746_v63 = vld [vmem:[%s3317_s28 + $0x18] sm:$0xff]  }
 0x172   : > { %v2747_v0 = vld [vmem:[%s3317_s28 + $0x38] sm:$0xff]   ;;  %v754_v2 = vld [vmem:[#allocation2 + $0x10] sm:$0xff]  ;;  %v752_v6 = vld [vmem:[#allocation2 + $0x40] sm:$0xff] }
 0x173   : > { %2528 = vmatpush3.bf16.msra.mxu0 %v2733_v50  ;;  %2582 = vmatpush3.bf16.msra.mxu1 %v2733_v50  ;;  %v746_v1 = vld [vmem:[#allocation2 + $0x58] sm:$0xff]  ;;  %v744_v5 = vld [vmem:[#allocation2 + $0x30] sm:$0xff]  ;;  %v745_v17 = vld [vmem:[#allocation2] sm:$0xff] }
 0x174   : > { %2529 = vmatprep.subr.bf16.mxu0 %v2734_v51  ;;  %2575 = vmatprep.subr.bf16.mxu1 %v2734_v51  ;;  %v747_v11 = vld [vmem:[#allocation2 + $0x18] sm:$0xff]  ;;  %v753_v18 = vld [vmem:[#allocation2 + $0x20] sm:$0xff]  ;;  %v750_v23 = vld [vmem:[#allocation2 + $0x8] sm:$0xff] }
 0x175   : > { %v755_v12 = vld [vmem:[#allocation2 + $0x38] sm:$0xff]  ;;  %v748_v29 = vld [vmem:[#allocation2 + $0x50] sm:$0xff]  ;;  %v756_v30 = vld [vmem:[#allocation2 + $0x60] sm:$0xff] }
 0x176   : > { %v758_v24 = vld [vmem:[#allocation2 + $0x78] sm:$0xff]  ;;  %v751_v35 = vld [vmem:[#allocation2 + $0x48] sm:$0xff]  ;;  %v757_v42 = vld [vmem:[#allocation2 + $0x70] sm:$0xff] }
 0x177   : > { %2530 = vmatpush3.bf16.msra.mxu0 %v2734_v51  ;;  %2583 = vmatpush3.bf16.msra.mxu1 %v2734_v51  ;;  %v759_v36 = vld [vmem:[#allocation2 + $0x28] sm:$0xff] }
 0x178   : > { %2531 = vmatprep.subr.bf16.mxu0 %v2735_v52  ;;  %2576 = vmatprep.subr.bf16.mxu1 %v2735_v52  ;;  %v749_v41 = vld [vmem:[#allocation2 + $0x68] sm:$0xff] }
 0x17b   : > { %2532 = vmatpush3.bf16.msra.mxu0 %v2735_v52  ;;  %2584 = vmatpush3.bf16.msra.mxu1 %v2735_v52 }
 0x17c   : > { %2533 = vmatprep.subr.bf16.mxu0 %v2736_v55  ;;  %2577 = vmatprep.subr.bf16.mxu1 %v2736_v55 }
 0x17f   : > { %2534 = vmatpush3.bf16.msra.mxu0 %v2736_v55  ;;  %2585 = vmatpush3.bf16.msra.mxu1 %v2736_v55 }
 0x180   : > { %2535 = vmatprep.subr.bf16.mxu0 %v2737_v56  ;;  %2578 = vmatprep.subr.bf16.mxu1 %v2737_v56 }
 0x183   : > { %2536 = vmatpush3.bf16.msra.mxu0 %v2737_v56  ;;  %2586 = vmatpush3.bf16.msra.mxu1 %v2737_v56 }
 0x184   : > { %2537 = vmatprep.subr.bf16.mxu0 %v2738_v57  ;;  %2579 = vmatprep.subr.bf16.mxu1 %v2738_v57 }
 0x187   : > { %2538 = vmatpush3.bf16.msra.mxu0 %v2738_v57  ;;  %2587 = vmatpush3.bf16.msra.mxu1 %v2738_v57 }
 0x188   : > { %2539 = vmatprep.subr.bf16.mxu0 %v2739_v58  ;;  %2580 = vmatprep.subr.bf16.mxu1 %v2739_v58 }
 0x18b   : > { %2540 = vmatpush3.bf16.msra.mxu0 %v2739_v58  ;;  %2588 = vmatpush3.bf16.msra.mxu1 %v2739_v58 }
 0x18e   : > { %2542 = vmatmul.mubr.bf16.vlgmr.msra.gmra.mxu0 %v2742_v59  ;;  %2550 = vmatmul.mubr.bf16.vlgmr.msra.gmra.mxu1 %v2743_v60 }
 0x18f   : > { %2545 = vmatprep.mubr.bf16.mxu0 %v2744_v61  ;;  %2553 = vmatprep.mubr.bf16.mxu1 %v2745_v62 }
 0x196   : > { %2546 = vmatmul.mubr.bf16.gmra.mxu0 %v2746_v63  ;;  %2554 = vmatmul.mubr.bf16.gmra.mxu1 %v2747_v0 }
 0x24e   : > { %v2543_v3 = vpop.f32.mrf.mxu0  ;;  %v2551_v4 = vpop.f32.mrf.mxu1 }
 0x24f   : > { %v987_v7 = vadd.f32 %v2543_v3, %v746_v1  ;;  %v995_v8 = vadd.f32 %v2551_v4, %v754_v2 }
 0x250   : > { %v922_v9 = vpop.f32.mrf.mxu0  ;;  %v954_v10 = vpop.f32.mrf.mxu1 }
 0x251   : > { %1003 = vst [vmem:[#allocation2 + $0x58] sm:$0xff] %v987_v7  ;;  %1011 = vst [vmem:[#allocation2 + $0x10] sm:$0xff] %v995_v8  ;;  %v985_v13 = vadd.f32 %v922_v9, %v744_v5  ;;  %v993_v14 = vadd.f32 %v954_v10, %v752_v6 }
 0x252   : > { %v2544_v15 = vpop.f32.mrf.mxu0  ;;  %v2552_v16 = vpop.f32.mrf.mxu1 }
 0x253   : > { %1001 = vst [vmem:[#allocation2 + $0x30] sm:$0xff] %v985_v13  ;;  %1009 = vst [vmem:[#allocation2 + $0x40] sm:$0xff] %v993_v14  ;;  %v988_v19 = vadd.f32 %v2544_v15, %v747_v11  ;;  %v996_v20 = vadd.f32 %v2552_v16, %v755_v12 }
 0x254   : > { %v925_v21 = vpop.f32.mrf.mxu0  ;;  %v957_v22 = vpop.f32.mrf.mxu1 }
 0x255   : > { %1004 = vst [vmem:[#allocation2 + $0x18] sm:$0xff] %v988_v19  ;;  %1012 = vst [vmem:[#allocation2 + $0x38] sm:$0xff] %v996_v20  ;;  %v986_v25 = vadd.f32 %v925_v21, %v745_v17  ;;  %v994_v26 = vadd.f32 %v957_v22, %v753_v18 }
 0x256   : > { %v2547_v27 = vpop.f32.mrf.mxu0  ;;  %v2555_v28 = vpop.f32.mrf.mxu1 }
 0x257   : > { %1002 = vst [vmem:[#allocation2] sm:$0xff] %v986_v25  ;;  %1010 = vst [vmem:[#allocation2 + $0x20] sm:$0xff] %v994_v26  ;;  %v991_v31 = vadd.f32 %v2547_v27, %v750_v23  ;;  %v999_v32 = vadd.f32 %v2555_v28, %v758_v24 }
 0x258   : > { %v938_v33 = vpop.f32.mrf.mxu0  ;;  %v970_v34 = vpop.f32.mrf.mxu1 }
 0x259   : > { %1007 = vst [vmem:[#allocation2 + $0x8] sm:$0xff] %v991_v31  ;;  %1015 = vst [vmem:[#allocation2 + $0x78] sm:$0xff] %v999_v32  ;;  %v989_v37 = vadd.f32 %v938_v33, %v748_v29  ;;  %v997_v38 = vadd.f32 %v970_v34, %v756_v30 }
 0x25a   : > { %v2548_v39 = vpop.f32.mrf.mxu0  ;;  %v2556_v40 = vpop.f32.mrf.mxu1 }
 0x25b   : > { %1005 = vst [vmem:[#allocation2 + $0x50] sm:$0xff] %v989_v37  ;;  %1013 = vst [vmem:[#allocation2 + $0x60] sm:$0xff] %v997_v38  ;;  %v992_v43 = vadd.f32 %v2548_v39, %v751_v35  ;;  %v1000_v44 = vadd.f32 %v2556_v40, %v759_v36  ;;  %1020 = sbr.rel (%p2101_p6) target bundleno = 1027 (0x403), region = 76 }
 0x25c   : > { %v941_v45 = vpop.f32.mrf.mxu0  ;;  %v973_v46 = vpop.f32.mrf.mxu1 }
 0x25d   : > { %1008 = vst [vmem:[#allocation2 + $0x48] sm:$0xff] %v992_v43  ;;  %1016 = vst [vmem:[#allocation2 + $0x28] sm:$0xff] %v1000_v44  ;;  %v990_v47 = vadd.f32 %v941_v45, %v749_v41  ;;  %v998_v48 = vadd.f32 %v973_v46, %v757_v42 }
 0x25f   : > { %1006 = vst [vmem:[#allocation2 + $0x68] sm:$0xff] %v990_v47  ;;  %1014 = vst [vmem:[#allocation2 + $0x70] sm:$0xff] %v998_v48 }
 0x260   : > { %v2748_v49 = vld [vmem:[#allocation11 + $0xe4] ss:$16 sps:$4 sm:$0xff]   ;;  %v2750_v50 = vld [vmem:[#allocation11 + $0xe0] ss:$16 sps:$4 sm:$0xff]   ;;  %v3108_v51 = vmov 0   ;;  %v1023_v16 = vld [vmem:[#allocation2 + $0x58] sm:$0xff]  ;;  %v1079_v42 = vlaneseq }
 0x261   : > { %1291 = vmatprep.mubr.bf16.mxu0 %v3108_v51  ;;  %1404 = vmatprep.mubr.bf16.mxu1 %v3108_v51  ;;  %v2751_v52 = vld [vmem:[#allocation11 + $0xc4] ss:$16 sps:$4 sm:$0xff]   ;;  %v2753_v53 = vld [vmem:[#allocation11 + $0xc0] ss:$16 sps:$4 sm:$0xff]   ;;  %v2772_v61 = vld [vmem:[#allocation11 + $0xec] ss:$16 sps:$4 sm:$0xff]  }
 0x262   : > { %1259 = vmatprep.subr.bf16.mxu0 %v2748_v49  ;;  %v2754_v54 = vld [vmem:[#allocation11 + $0xa4] ss:$16 sps:$4 sm:$0xff]   ;;  %v2756_v55 = vld [vmem:[#allocation11 + $0xa0] ss:$16 sps:$4 sm:$0xff]   ;;  %v2774_v62 = vld [vmem:[#allocation11 + $0xe8] ss:$16 sps:$4 sm:$0xff]   ;;  %1372 = vmatprep.subr.bf16.mxu1 %v2772_v61 }
 0x263   : > { %1260 = vmatpush1.bf16.msra.mxu0 %v2750_v50  ;;  %v2757_v56 = vld [vmem:[#allocation11 + $0x84] ss:$16 sps:$4 sm:$0xff]   ;;  %v2759_v57 = vld [vmem:[#allocation11 + $0x80] ss:$16 sps:$4 sm:$0xff]   ;;  %v2775_v0 = vld [vmem:[#allocation11 + $0xcc] ss:$16 sps:$4 sm:$0xff]   ;;  %1373 = vmatpush1.bf16.msra.mxu1 %v2774_v62 }
 0x264   : > { %1261 = vmatprep.subr.bf16.mxu0 %v2751_v52  ;;  %v2760_v58 = vld [vmem:[#allocation11 + $0x64] ss:$16 sps:$4 sm:$0xff]   ;;  %v2762_v59 = vld [vmem:[#allocation11 + $0x60] ss:$16 sps:$4 sm:$0xff]   ;;  %v2777_v2 = vld [vmem:[#allocation11 + $0xc8] ss:$16 sps:$4 sm:$0xff]   ;;  %1374 = vmatprep.subr.bf16.mxu1 %v2775_v0 }
 0x265   : > { %v2763_v60 = vld [vmem:[#allocation11 + $0x44] ss:$16 sps:$4 sm:$0xff]   ;;  %v2765_v63 = vld [vmem:[#allocation11 + $0x40] ss:$16 sps:$4 sm:$0xff]   ;;  %v2778_v3 = vld [vmem:[#allocation11 + $0xac] ss:$16 sps:$4 sm:$0xff]  }
 0x266   : > { %v2766_v1 = vld [vmem:[#allocation11 + $0x24] ss:$16 sps:$4 sm:$0xff]   ;;  %v2768_v4 = vld [vmem:[#allocation11 + $0x20] ss:$16 sps:$4 sm:$0xff]   ;;  %v2780_v6 = vld [vmem:[#allocation11 + $0xa8] ss:$16 sps:$4 sm:$0xff]  }
 0x267   : > { %1262 = vmatpush1.bf16.msra.mxu0 %v2753_v53  ;;  %v2769_v5 = vld [vmem:[#allocation11 + $0x4] ss:$16 sps:$4 sm:$0xff]   ;;  %1375 = vmatpush1.bf16.msra.mxu1 %v2777_v2  ;;  %v2781_v7 = vld [vmem:[#allocation11 + $0x8c] ss:$16 sps:$4 sm:$0xff]   ;;  %v2771_v8 = vld [vmem:[#allocation11] ss:$16 sps:$4 sm:$0xff]  }
 0x268   : > { %1263 = vmatprep.subr.bf16.mxu0 %v2754_v54  ;;  %1376 = vmatprep.subr.bf16.mxu1 %v2778_v3  ;;  %v1021_v9 = vld [vmem:[#allocation2 + $0x30] sm:$0xff]  ;;  %v1022_v10 = vld [vmem:[#allocation2] sm:$0xff]  ;;  %v2783_v11 = vld [vmem:[#allocation11 + $0x88] ss:$16 sps:$4 sm:$0xff]   ;;  %v1080_v43 = vshrl.u32 %v1079_v42, 7 }
 0x269   : > { %v2784_v12 = vld [vmem:[#allocation11 + $0x6c] ss:$16 sps:$4 sm:$0xff]   ;;  %v1037_v13 = vpack.c.bf16 %v1022_v10, %v1021_v9  ;;  %v2786_v14 = vld [vmem:[#allocation11 + $0x68] ss:$16 sps:$4 sm:$0xff]   ;;  %v1025_v23 = vld [vmem:[#allocation2 + $0x50] sm:$0xff] }
 0x26a   : > { %v2787_v15 = vld [vmem:[#allocation11 + $0x4c] ss:$16 sps:$4 sm:$0xff]   ;;  %v2789_v18 = vld [vmem:[#allocation11 + $0x48] ss:$16 sps:$4 sm:$0xff]   ;;  %v1029_v30 = vld [vmem:[#allocation2 + $0x40] sm:$0xff]  ;;  %v1085_v44 = vsub.s32 1, %v1080_v43 }
 0x26b   : > { %1264 = vmatpush1.bf16.msra.mxu0 %v2756_v55  ;;  %1377 = vmatpush1.bf16.msra.mxu1 %v2780_v6  ;;  %v1024_v17 = vld [vmem:[#allocation2 + $0x18] sm:$0xff]  ;;  %v1026_v24 = vld [vmem:[#allocation2 + $0x68] sm:$0xff]  ;;  %v1030_v31 = vld [vmem:[#allocation2 + $0x20] sm:$0xff]  ;;  %v1081_v45 = vsub.s32 0, %v1080_v43  ;;  %v1089_v61 = vsub.s32 2, %v1080_v43 }
 0x26c   : > { %1265 = vmatprep.subr.bf16.mxu0 %v2757_v56  ;;  %1378 = vmatprep.subr.bf16.mxu1 %v2781_v7  ;;  %v2790_v19 = vld [vmem:[#allocation11 + $0x2c] ss:$16 sps:$4 sm:$0xff]   ;;  %v1038_v20 = vpack.c.bf16 %v1024_v17, %v1023_v16  ;;  %v2792_v21 = vld [vmem:[#allocation11 + $0x28] ss:$16 sps:$4 sm:$0xff]   ;;  %v1039_v26 = vpack.c.bf16 %v1026_v24, %v1025_v23  ;;  %v1041_v32 = vpack.c.bf16 %v1030_v31, %v1029_v30  ;;  %v1031_v33 = vld [vmem:[#allocation2 + $0x10] sm:$0xff] }
 0x26d   : > { %v2793_v22 = vld [vmem:[#allocation11 + $0xc] ss:$16 sps:$4 sm:$0xff]   ;;  %v2795_v25 = vld [vmem:[#allocation11 + $0x8] ss:$16 sps:$4 sm:$0xff]   ;;  %v1033_v36 = vld [vmem:[#allocation2 + $0x60] sm:$0xff] }
 0x26e   : > { %v1027_v27 = vld [vmem:[#allocation2 + $0x8] sm:$0xff]  ;;  %v1032_v34 = vld [vmem:[#allocation2 + $0x38] sm:$0xff]  ;;  %v1034_v37 = vld [vmem:[#allocation2 + $0x70] sm:$0xff] }
 0x26f   : > { %1266 = vmatpush1.bf16.msra.mxu0 %v2759_v57  ;;  %1379 = vmatpush1.bf16.msra.mxu1 %v2783_v11  ;;  %v1028_v28 = vld [vmem:[#allocation2 + $0x48] sm:$0xff]  ;;  %v1042_v35 = vpack.c.bf16 %v1032_v34, %v1031_v33  ;;  %v1043_v38 = vpack.c.bf16 %v1034_v37, %v1033_v36  ;;  %v1035_v39 = vld [vmem:[#allocation2 + $0x78] sm:$0xff]  ;;  %v1077_v46 = vld [vmem:[%s3518_s6] sm:$0xf] }
 0x270   : > { %1267 = vmatprep.subr.bf16.mxu0 %v2760_v58  ;;  %1380 = vmatprep.subr.bf16.mxu1 %v2784_v12  ;;  %v1040_v29 = vpack.c.bf16 %v1028_v28, %v1027_v27  ;;  %v1036_v40 = vld [vmem:[#allocation2 + $0x28] sm:$0xff]  ;;  %v3369_v47 = vrot.slane %v1077_v46, %v1085_v44  ;;  %v3371_v49 = vrot.slane %v1077_v46, %v1081_v45 }
 0x271   : > { %v1044_v41 = vpack.c.bf16 %v1036_v40, %v1035_v39 }
 0x273   : > { %1268 = vmatpush1.bf16.msra.mxu0 %v2762_v59  ;;  %1381 = vmatpush1.bf16.msra.mxu1 %v2786_v14 }
 0x274   : > { %1269 = vmatprep.subr.bf16.mxu0 %v2763_v60  ;;  %1382 = vmatprep.subr.bf16.mxu1 %v2787_v15 }
 0x277   : > { %1270 = vmatpush1.bf16.msra.mxu0 %v2765_v63  ;;  %1383 = vmatpush1.bf16.msra.mxu1 %v2789_v18 }
 0x278   : > { %1271 = vmatprep.subr.bf16.mxu0 %v2766_v1  ;;  %1384 = vmatprep.subr.bf16.mxu1 %v2790_v19  ;;  %v1093_v1 = vsub.s32 3, %v1080_v43 }
 0x27b   : > { %1272 = vmatpush1.bf16.msra.mxu0 %v2768_v4  ;;  %1385 = vmatpush1.bf16.msra.mxu1 %v2792_v21 }
 0x27c   : > { %1273 = vmatprep.subr.bf16.mxu0 %v2769_v5  ;;  %1386 = vmatprep.subr.bf16.mxu1 %v2793_v22  ;;  %v3381_v5 = vrot.slane %v1077_v46, %v1089_v61 }
 0x27f   : > { %1274 = vmatpush1.bf16.msra.mxu0 %v2771_v8  ;;  %1387 = vmatpush1.bf16.msra.mxu1 %v2795_v25  ;;  %v3383_v8 = vrot.slane %v1077_v46, %v1093_v1 }
 0x282   : > { %1292 = vmatmul.mubr.bf16.vlgmr.msra.gmra.mxu0 %v1037_v13  ;;  %1405 = vmatmul.mubr.bf16.vlgmr.msra.gmra.mxu1 %v1037_v13 }
 0x283   : > { %1301 = vmatprep.mubr.bf16.mxu0 %v3108_v51  ;;  %1414 = vmatprep.mubr.bf16.mxu1 %v3108_v51 }
 0x28a   : > { %1302 = vmatmul.mubr.bf16.gmra.mxu0 %v1038_v20  ;;  %1415 = vmatmul.mubr.bf16.gmra.mxu1 %v1038_v20 }
 0x28b   : > { %1311 = vmatprep.mubr.bf16.mxu0 %v3108_v51  ;;  %1424 = vmatprep.mubr.bf16.mxu1 %v3108_v51 }
 0x292   : > { %1312 = vmatmul.mubr.bf16.gmra.mxu0 %v1039_v26  ;;  %1425 = vmatmul.mubr.bf16.gmra.mxu1 %v1039_v26 }
 0x293   : > { %1321 = vmatprep.mubr.bf16.mxu0 %v3108_v51  ;;  %1434 = vmatprep.mubr.bf16.mxu1 %v3108_v51 }
 0x29a   : > { %1322 = vmatmul.mubr.bf16.gmra.mxu0 %v1040_v29  ;;  %1435 = vmatmul.mubr.bf16.gmra.mxu1 %v1040_v29 }
 0x29b   : > { %1331 = vmatprep.mubr.bf16.mxu0 %v3108_v51  ;;  %1444 = vmatprep.mubr.bf16.mxu1 %v3108_v51 }
 0x2a2   : > { %1332 = vmatmul.mubr.bf16.gmra.mxu0 %v1041_v32  ;;  %1445 = vmatmul.mubr.bf16.gmra.mxu1 %v1041_v32 }
 0x2a3   : > { %1341 = vmatprep.mubr.bf16.mxu0 %v3108_v51  ;;  %1454 = vmatprep.mubr.bf16.mxu1 %v3108_v51 }
 0x2aa   : > { %1342 = vmatmul.mubr.bf16.gmra.mxu0 %v1042_v35  ;;  %1455 = vmatmul.mubr.bf16.gmra.mxu1 %v1042_v35 }
 0x2ab   : > { %1351 = vmatprep.mubr.bf16.mxu0 %v3108_v51  ;;  %1464 = vmatprep.mubr.bf16.mxu1 %v3108_v51 }
 0x2b2   : > { %1352 = vmatmul.mubr.bf16.gmra.mxu0 %v1043_v38  ;;  %1465 = vmatmul.mubr.bf16.gmra.mxu1 %v1043_v38 }
 0x2b3   : > { %1361 = vmatprep.mubr.bf16.mxu0 %v3108_v51  ;;  %1474 = vmatprep.mubr.bf16.mxu1 %v3108_v51 }
 0x2ba   : > { %1362 = vmatmul.mubr.bf16.gmra.mxu0 %v1044_v41  ;;  %1475 = vmatmul.mubr.bf16.gmra.mxu1 %v1044_v41 }
 0x342   : > { %v1293_v48 = vpop.f32.mrf.mxu0  ;;  %v1406_v7 = vpop.f32.mrf.mxu1 }
 0x343   : > { %v1294_v51 = vadd.f32 %v1293_v48, %v3371_v49  ;;  %v1407_v12 = vadd.f32 %v1406_v7, %v3381_v5 }
 0x344   : > { %v1295_v50 = vpop.f32.mrf.mxu0  ;;  %v1408_v10 = vpop.f32.mrf.mxu1 }
 0x345   : > { %v1296_v52 = vadd.f32 %v1295_v50, %v3369_v47  ;;  %v1409_v17 = vadd.f32 %v1408_v10, %v3383_v8 }
 0x346   : > { %v1297_v53 = vpop.f32.mrf.mxu0  ;;  %v1410_v14 = vpop.f32.mrf.mxu1 }
 0x347   : > { %v1298_v54 = vadd.f32 %v1297_v53, %v3371_v49  ;;  %1565 = vxpose.xlu0.b32.start [1/16] %v1296_v52, 128  ;;  %v1411_v18 = vadd.f32 %v1410_v14, %v3381_v5 }
 0x348   : > { %v1299_v55 = vpop.f32.mrf.mxu0  ;;  %v1412_v20 = vpop.f32.mrf.mxu1 }
 0x349   : > { %v2276_v56 = vpack.c.bf16 %v1298_v54, %v1294_v51  ;;  %v1300_v57 = vadd.f32 %v1299_v55, %v3369_v47  ;;  %v2356_v23 = vpack.c.bf16 %v1411_v18, %v1407_v12  ;;  %v1413_v24 = vadd.f32 %v1412_v20, %v3383_v8 }
 0x34a   : > { %v1303_v58 = vpop.f32.mrf.mxu0  ;;  %v1416_v26 = vpop.f32.mrf.mxu1 }
 0x34b   : > { %2277 = vst [vmem:[#allocation12] sm:$0xff] %v2276_v56   ;;  %1566 = vxpose.xlu0.b32.cont [2/16] %v1300_v57, 128  ;;  %v1304_v63 = vadd.f32 %v1303_v58, %v3371_v49  ;;  %2357 = vst [vmem:[#allocation15] sm:$0xff] %v2356_v23   ;;  %v2396_v27 = vpack.c.bf16 %v1413_v24, %v1409_v17  ;;  %v1417_v31 = vadd.f32 %v1416_v26, %v3381_v5 }
 0x34c   : > { %v1305_v59 = vpop.f32.mrf.mxu0  ;;  %v1418_v29 = vpop.f32.mrf.mxu1 }
 0x34d   : > { %v1306_v60 = vadd.f32 %v1305_v59, %v3369_v47  ;;  %2397 = vst [vmem:[#allocation16] sm:$0xff] %v2396_v27   ;;  %v1419_v36 = vadd.f32 %v1418_v29, %v3383_v8 }
 0x34e   : > { %v1307_v62 = vpop.f32.mrf.mxu0  ;;  %v1420_v33 = vpop.f32.mrf.mxu1 }
 0x34f   : > { %v1308_v0 = vadd.f32 %v1307_v62, %v3371_v49  ;;  %1567 = vxpose.xlu0.b32.cont [3/16] %v1306_v60, 128  ;;  %v1421_v37 = vadd.f32 %v1420_v33, %v3381_v5 }
 0x350   : > { %v1309_v2 = vpop.f32.mrf.mxu0  ;;  %v1422_v39 = vpop.f32.mrf.mxu1 }
 0x351   : > { %v2281_v3 = vpack.c.bf16 %v1308_v0, %v1304_v63  ;;  %v1310_v4 = vadd.f32 %v1309_v2, %v3369_v47  ;;  %v2361_v42 = vpack.c.bf16 %v1421_v37, %v1417_v31  ;;  %v1423_v43 = vadd.f32 %v1422_v39, %v3383_v8 }
 0x352   : > { %v1313_v6 = vpop.f32.mrf.mxu0  ;;  %v1426_v45 = vpop.f32.mrf.mxu1 }
 0x353   : > { %2433 = vst [vmem:[#allocation12 + $0x8] sm:$0xff] %v2281_v3   ;;  %1568 = vxpose.xlu0.b32.cont [4/16] %v1310_v4, 128  ;;  %v1314_v15 = vadd.f32 %v1313_v6, %v3371_v49  ;;  %2447 = vst [vmem:[#allocation15 + $0x8] sm:$0xff] %v2361_v42   ;;  %v2401_v46 = vpack.c.bf16 %v1423_v43, %v1419_v36  ;;  %v1427_v53 = vadd.f32 %v1426_v45, %v3381_v5 }
 0x354   : > { %v1315_v9 = vpop.f32.mrf.mxu0  ;;  %v1428_v50 = vpop.f32.mrf.mxu1 }
 0x355   : > { %v1316_v11 = vadd.f32 %v1315_v9, %v3369_v47  ;;  %2454 = vst [vmem:[#allocation16 + $0x8] sm:$0xff] %v2401_v46   ;;  %v1429_v57 = vadd.f32 %v1428_v50, %v3383_v8 }
 0x356   : > { %v1317_v13 = vpop.f32.mrf.mxu0  ;;  %v1430_v54 = vpop.f32.mrf.mxu1 }
 0x357   : > { %v1318_v16 = vadd.f32 %v1317_v13, %v3371_v49  ;;  %1569 = vxpose.xlu0.b32.cont [5/16] %v1316_v11, 128  ;;  %v1431_v58 = vadd.f32 %v1430_v54, %v3381_v5 }
 0x358   : > { %v1319_v19 = vpop.f32.mrf.mxu0  ;;  %v1432_v60 = vpop.f32.mrf.mxu1 }
 0x359   : > { %v2286_v21 = vpack.c.bf16 %v1318_v16, %v1314_v15  ;;  %v1320_v22 = vadd.f32 %v1319_v19, %v3369_v47  ;;  %v2366_v63 = vpack.c.bf16 %v1431_v58, %v1427_v53  ;;  %v1433_v0 = vadd.f32 %v1432_v60, %v3383_v8 }
 0x35a   : > { %v1323_v25 = vpop.f32.mrf.mxu0  ;;  %v1436_v2 = vpop.f32.mrf.mxu1 }
 0x35b   : > { %2434 = vst [vmem:[#allocation12 + $0x10] sm:$0xff] %v2286_v21   ;;  %1570 = vxpose.xlu0.b32.cont [6/16] %v1320_v22, 128  ;;  %v1324_v34 = vadd.f32 %v1323_v25, %v3371_v49  ;;  %2448 = vst [vmem:[#allocation15 + $0x10] sm:$0xff] %v2366_v63   ;;  %v2406_v3 = vpack.c.bf16 %v1433_v0, %v1429_v57  ;;  %v1437_v9 = vadd.f32 %v1436_v2, %v3381_v5 }
 0x35c   : > { %v1325_v28 = vpop.f32.mrf.mxu0  ;;  %v1438_v6 = vpop.f32.mrf.mxu1 }
 0x35d   : > { %v1326_v30 = vadd.f32 %v1325_v28, %v3369_v47  ;;  %2455 = vst [vmem:[#allocation16 + $0x10] sm:$0xff] %v2406_v3   ;;  %v1439_v14 = vadd.f32 %v1438_v6, %v3383_v8 }
 0x35e   : > { %v1327_v32 = vpop.f32.mrf.mxu0  ;;  %v1440_v11 = vpop.f32.mrf.mxu1 }
 0x35f   : > { %v1328_v35 = vadd.f32 %v1327_v32, %v3371_v49  ;;  %1571 = vxpose.xlu0.b32.cont [7/16] %v1326_v30, 128  ;;  %v1441_v15 = vadd.f32 %v1440_v11, %v3381_v5 }
 0x360   : > { %v1329_v38 = vpop.f32.mrf.mxu0  ;;  %v1442_v17 = vpop.f32.mrf.mxu1 }
 0x361   : > { %v2291_v40 = vpack.c.bf16 %v1328_v35, %v1324_v34  ;;  %v1330_v41 = vadd.f32 %v1329_v38, %v3369_v47  ;;  %v2371_v20 = vpack.c.bf16 %v1441_v15, %v1437_v9  ;;  %v1443_v21 = vadd.f32 %v1442_v17, %v3383_v8 }
 0x362   : > { %v1333_v44 = vpop.f32.mrf.mxu0  ;;  %v1446_v23 = vpop.f32.mrf.mxu1 }
 0x363   : > { %2435 = vst [vmem:[#allocation12 + $0x18] sm:$0xff] %v2291_v40   ;;  %1572 = vxpose.xlu0.b32.cont [8/16] %v1330_v41, 128  ;;  %v1334_v55 = vadd.f32 %v1333_v44, %v3371_v49  ;;  %2449 = vst [vmem:[#allocation15 + $0x18] sm:$0xff] %v2371_v20   ;;  %v2411_v24 = vpack.c.bf16 %v1443_v21, %v1439_v14  ;;  %v1447_v28 = vadd.f32 %v1446_v23, %v3381_v5 }
 0x364   : > { %v1335_v48 = vpop.f32.mrf.mxu0  ;;  %v1448_v26 = vpop.f32.mrf.mxu1 }
 0x365   : > { %v1336_v52 = vadd.f32 %v1335_v48, %v3369_v47  ;;  %2456 = vst [vmem:[#allocation16 + $0x18] sm:$0xff] %v2411_v24   ;;  %v1449_v33 = vadd.f32 %v1448_v26, %v3383_v8 }
 0x366   : > { %v1337_v51 = vpop.f32.mrf.mxu0  ;;  %v1450_v30 = vpop.f32.mrf.mxu1 }
 0x367   : > { %v1338_v56 = vadd.f32 %v1337_v51, %v3371_v49  ;;  %1573 = vxpose.xlu0.b32.cont [9/16] %v1336_v52, 128  ;;  %v1451_v34 = vadd.f32 %v1450_v30, %v3381_v5 }
 0x368   : > { %v1339_v59 = vpop.f32.mrf.mxu0  ;;  %v1452_v36 = vpop.f32.mrf.mxu1 }
 0x369   : > { %v2296_v61 = vpack.c.bf16 %v1338_v56, %v1334_v55  ;;  %v1340_v62 = vadd.f32 %v1339_v59, %v3369_v47  ;;  %v2376_v39 = vpack.c.bf16 %v1451_v34, %v1447_v28  ;;  %v1453_v40 = vadd.f32 %v1452_v36, %v3383_v8 }
 0x36a   : > { %v1343_v1 = vpop.f32.mrf.mxu0  ;;  %v1456_v42 = vpop.f32.mrf.mxu1 }
 0x36b   : > { %2436 = vst [vmem:[#allocation12 + $0x20] sm:$0xff] %v2296_v61   ;;  %1574 = vxpose.xlu0.b32.cont [10/16] %v1340_v62, 128  ;;  %v1344_v12 = vadd.f32 %v1343_v1, %v3371_v49  ;;  %2450 = vst [vmem:[#allocation15 + $0x20] sm:$0xff] %v2376_v39   ;;  %v2416_v43 = vpack.c.bf16 %v1453_v40, %v1449_v33  ;;  %v1457_v48 = vadd.f32 %v1456_v42, %v3381_v5 }
 0x36c   : > { %v1345_v4 = vpop.f32.mrf.mxu0  ;;  %v1458_v45 = vpop.f32.mrf.mxu1 }
 0x36d   : > { %v1346_v7 = vadd.f32 %v1345_v4, %v3369_v47  ;;  %2457 = vst [vmem:[#allocation16 + $0x20] sm:$0xff] %v2416_v43   ;;  %v1459_v54 = vadd.f32 %v1458_v45, %v3383_v8 }
 0x36e   : > { %v1347_v10 = vpop.f32.mrf.mxu0  ;;  %v1460_v52 = vpop.f32.mrf.mxu1 }
 0x36f   : > { %v1348_v13 = vadd.f32 %v1347_v10, %v3371_v49  ;;  %1575 = vxpose.xlu0.b32.cont [11/16] %v1346_v7, 128  ;;  %v1461_v55 = vadd.f32 %v1460_v52, %v3381_v5 }
 0x370   : > { %v1349_v16 = vpop.f32.mrf.mxu0  ;;  %v1462_v57 = vpop.f32.mrf.mxu1 }
 0x371   : > { %v2301_v18 = vpack.c.bf16 %v1348_v13, %v1344_v12  ;;  %v1350_v19 = vadd.f32 %v1349_v16, %v3369_v47  ;;  %v2381_v60 = vpack.c.bf16 %v1461_v55, %v1457_v48  ;;  %v1463_v61 = vadd.f32 %v1462_v57, %v3383_v8 }
 0x372   : > { %v1353_v22 = vpop.f32.mrf.mxu0  ;;  %v1466_v62 = vpop.f32.mrf.mxu1 }
 0x373   : > { %2437 = vst [vmem:[#allocation12 + $0x28] sm:$0xff] %v2301_v18   ;;  %1576 = vxpose.xlu0.b32.cont [12/16] %v1350_v19, 128  ;;  %v1354_v31 = vadd.f32 %v1353_v22, %v3371_v49  ;;  %2451 = vst [vmem:[#allocation15 + $0x28] sm:$0xff] %v2381_v60   ;;  %v2421_v63 = vpack.c.bf16 %v1463_v61, %v1459_v54 }
 0x374   : > { %v1355_v25 = vpop.f32.mrf.mxu0  ;;  %v1468_v0 = vpop.f32.mrf.mxu1 }
 0x375   : > { %v1356_v27 = vadd.f32 %v1355_v25, %v3369_v47  ;;  %2458 = vst [vmem:[#allocation16 + $0x28] sm:$0xff] %v2421_v63   ;;  %v1469_v2 = vadd.f32 %v1468_v0, %v3383_v8 }
 0x376   : > { %v1357_v29 = vpop.f32.mrf.mxu0  ;;  %v1470_v1 = vpop.f32.mrf.mxu1 }
 0x377   : > { %v1358_v32 = vadd.f32 %v1357_v29, %v3371_v49  ;;  %1577 = vxpose.xlu0.b32.cont [13/16] %v1356_v27, 128  ;;  %v1471_v3 = vadd.f32 %v1470_v1, %v3381_v5 }
 0x378   : > { %v1359_v35 = vpop.f32.mrf.mxu0  ;;  %v1472_v4 = vpop.f32.mrf.mxu1 }
 0x379   : > { %v2306_v37 = vpack.c.bf16 %v1358_v32, %v1354_v31  ;;  %v1360_v38 = vadd.f32 %v1359_v35, %v3369_v47 }
 0x37a   : > { %v1363_v41 = vpop.f32.mrf.mxu0  ;;  %v1476_v7 = vpop.f32.mrf.mxu1 }
 0x37b   : > { %2438 = vst [vmem:[#allocation12 + $0x30] sm:$0xff] %v2306_v37   ;;  %1578 = vxpose.xlu0.b32.cont [14/16] %v1360_v38, 128  ;;  %v1364_v53 = vadd.f32 %v1363_v41, %v3371_v49  ;;  %v1477_v11 = vadd.f32 %v1476_v7, %v3381_v5 }
 0x37c   : > { %v1365_v44 = vpop.f32.mrf.mxu0  ;;  %v1478_v10 = vpop.f32.mrf.mxu1 }
 0x37d   : > { %v1366_v46 = vadd.f32 %v1365_v44, %v3369_v47  ;;  %v1479_v13 = vadd.f32 %v1478_v10, %v3383_v8 }
 0x37e   : > { %v1367_v50 = vpop.f32.mrf.mxu0  ;;  %v1480_v12 = vpop.f32.mrf.mxu1 }
 0x37f   : > { %v1368_v51 = vadd.f32 %v1367_v50, %v3371_v49  ;;  %1579 = vxpose.xlu0.b32.cont [15/16] %v1366_v46, 128  ;;  %v1467_v49 = vadd.f32 %v1466_v62, %v3381_v5  ;;  %v1481_v14 = vadd.f32 %v1480_v12, %v3381_v5 }
 0x380   : > { %v1369_v56 = vpop.f32.mrf.mxu0  ;;  %v1482_v15 = vpop.f32.mrf.mxu1 }
 0x381   : > { %v2311_v58 = vpack.c.bf16 %v1368_v51, %v1364_v53  ;;  %v1370_v59 = vadd.f32 %v1369_v56, %v3369_v47  ;;  %v2386_v6 = vpack.c.bf16 %v1471_v3, %v1467_v49  ;;  %v1473_v47 = vadd.f32 %v1472_v4, %v3383_v8 }
 0x382   : > { %v2391_v16 = vpack.c.bf16 %v1481_v14, %v1477_v11  ;;  %v1483_v17 = vadd.f32 %v1482_v15, %v3383_v8 }
 0x383   : > { %2439 = vst [vmem:[#allocation12 + $0x38] sm:$0xff] %v2311_v58   ;;  %1580 = vxpose.xlu0.b32.end [16/16] %v1370_v59, 128  ;;  %2452 = vst [vmem:[#allocation15 + $0x30] sm:$0xff] %v2386_v6   ;;  %v2426_v9 = vpack.c.bf16 %v1473_v47, %v1469_v2 }
 0x384   : > { %2453 = vst [vmem:[#allocation15 + $0x38] sm:$0xff] %v2391_v16   ;;  %v2431_v18 = vpack.c.bf16 %v1483_v17, %v1479_v13 }
 0x385   : > { %2459 = vst [vmem:[#allocation16 + $0x30] sm:$0xff] %v2426_v9  }
 0x386   : > { %2460 = vst [vmem:[#allocation16 + $0x38] sm:$0xff] %v2431_v18  }
 0x3c3   : > { %v1581_v19 = vpop.trf.xlu0 }
 0x3c7   : > { %v1582_v20 = vpop.trf.xlu0 }
 0x3c8   : > { %v2316_v21 = vpack.c.bf16 %v1582_v20, %v1581_v19 }
 0x3ca   : > { %2317 = vst [vmem:[#allocation13] sm:$0xff] %v2316_v21  }
 0x3cb   : > { %v1583_v22 = vpop.trf.xlu0 }
 0x3cf   : > { %v1584_v23 = vpop.trf.xlu0 }
 0x3d0   : > { %v2321_v24 = vpack.c.bf16 %v1584_v23, %v1583_v22 }
 0x3d2   : > { %2440 = vst [vmem:[#allocation13 + $0x8] sm:$0xff] %v2321_v24  }
 0x3d3   : > { %v1585_v25 = vpop.trf.xlu0 }
 0x3d7   : > { %v1586_v26 = vpop.trf.xlu0 }
 0x3d8   : > { %v2326_v27 = vpack.c.bf16 %v1586_v26, %v1585_v25 }
 0x3da   : > { %2441 = vst [vmem:[#allocation13 + $0x10] sm:$0xff] %v2326_v27  }
 0x3db   : > { %v1587_v5 = vpop.trf.xlu0 }
 0x3df   : > { %v1588_v28 = vpop.trf.xlu0 }
 0x3e0   : > { %v2331_v29 = vpack.c.bf16 %v1588_v28, %v1587_v5 }
 0x3e2   : > { %2442 = vst [vmem:[#allocation13 + $0x18] sm:$0xff] %v2331_v29  }
 0x3e3   : > { %v1589_v8 = vpop.trf.xlu0 }
 0x3e7   : > { %v1590_v30 = vpop.trf.xlu0 }
 0x3e8   : > { %v2336_v31 = vpack.c.bf16 %v1590_v30, %v1589_v8 }
 0x3ea   : > { %2443 = vst [vmem:[#allocation13 + $0x20] sm:$0xff] %v2336_v31  }
 0x3eb   : > { %v1591_v32 = vpop.trf.xlu0 }
 0x3ef   : > { %v1592_v33 = vpop.trf.xlu0 }
 0x3f0   : > { %v2341_v34 = vpack.c.bf16 %v1592_v33, %v1591_v32 }
 0x3f2   : > { %2444 = vst [vmem:[#allocation13 + $0x28] sm:$0xff] %v2341_v34  }
 0x3f3   : > { %v1593_v35 = vpop.trf.xlu0 }
 0x3f7   : > { %v1594_v36 = vpop.trf.xlu0 }
 0x3f8   : > { %v2346_v37 = vpack.c.bf16 %v1594_v36, %v1593_v35 }
 0x3fa   : > { %2445 = vst [vmem:[#allocation13 + $0x30] sm:$0xff] %v2346_v37  }
 0x3fb   : > { %v1595_v38 = vpop.trf.xlu0 }
 0x3ff   : > { %v1596_v39 = vpop.trf.xlu0 }
 0x400   : > { %v2351_v40 = vpack.c.bf16 %v1596_v39, %v1595_v38 }
 0x402   : > { %2446 = vst [vmem:[#allocation13 + $0x38] sm:$0xff] %v2351_v40  }
 0x403 PF: > { %p2645_p7 = scmp.eq.s32.totalorder %s3199_s19, 2  ;;  %s3109_s10 = smov [#allocation13]  }
 0x404   : > { %s1861_s13 = sshll.u32 %s3109_s10, 4  ;;  %s1862_s13 = int_to_ptr.vmem [resolvable:$true] %s1861_s13 }
 0x405   : > { %s2930_s23 = scalar_lea.vmem %s1862_s13, 1024  ;;  %p2937_p3 = scmp.lt.s32.totalorder %s1862_s13, %s1862_s13 }
 0x406   : > { %p2931_p13 = scmp.ne.s32.totalorder %s1862_s13, %s2930_s23  ;;  %p2938_p11 = scmp.lt.s32.totalorder %s2930_s23, %s2930_s23 }
 0x408   : > { %p2932_p9 = pnand %p2931_p13, %p2645_p7  ;;  %p2939_p0 = por %p2938_p11, %p2937_p3 }
 0x40a   : > { %p2933_p4 = pneg %p2932_p9 }
 0x40c   : > { %p2940_p1 = pnand %p2939_p0, %p2933_p4 }
 0x40e   : > { %2943 = shalt.err (!%p2940_p1)
}
 0x40f   : > { %s3110_s1 = smov 64   ;;  %s3111_s7 = smov 4  }
 0x410   : > { %s3554_s24 = sld [smem:[#allocation31_spill]]  ;;  %s3112_s3 = smov [#allocation12]  }
 0x411   : > { %s1846_s8 = sshll.u32 %s3112_s3, 4  ;;  %s3113_s12 = smov [#allocation15]   ;;  %s1847_s8 = int_to_ptr.vmem [resolvable:$true] %s1846_s8 }
 0x412   : > { %s1877_s20 = sshll.u32 %s3113_s12, 4  ;;  %s2954_s25 = scalar_lea.vmem %s1847_s8, 1024  ;;  %s1878_s20 = int_to_ptr.vmem [resolvable:$true] %s1877_s20 }
 0x413   : > { %p2955_p10 = scmp.ne.s32.totalorder %s1847_s8, %s2954_s25  ;;  %p2961_p12 = scmp.lt.s32.totalorder %s1847_s8, %s1847_s8 }
 0x414   : > { %p2962_p2 = scmp.lt.s32.totalorder %s2954_s25, %s2954_s25 }
 0x415   : > { %p2956_p5 = pnand %p2955_p10, %p2645_p7 }
 0x416   : > { %2608 = dma.vmem_to_hbm [thread:$0]  (%p2645_p7), %s1862_s13, 1024, %s3554_s24, [#allocation14], %s3110_s1, %s3110_s1, %s3111_s7  }
 0x417   : > { %p2957_p8 = pneg %p2956_p5  ;;  %p2963_p6 = por %p2962_p2, %p2961_p12 }
 0x419   : > { %p2964_p13 = pnand %p2963_p6, %p2957_p8 }
 0x41b   : > { %2967 = shalt.err (!%p2964_p13)
}
 0x41c   : > { %s3555_s26 = sld [smem:[#allocation30_spill]]  ;;  %s2978_s29 = scalar_lea.vmem %s1878_s20, 1024 }
 0x41d   : > { %p2979_p9 = scmp.ne.s32.totalorder %s1878_s20, %s2978_s29  ;;  %p2985_p11 = scmp.lt.s32.totalorder %s1878_s20, %s1878_s20 }
 0x41e   : > { %p2986_p0 = scmp.lt.s32.totalorder %s2978_s29, %s2978_s29 }
 0x41f   : > { %p2980_p4 = pnand %p2979_p9, %p2645_p7 }
 0x420   : > { %p2987_p1 = por %p2986_p0, %p2985_p11 }
 0x421   : > { %p2981_p3 = pneg %p2980_p4 }
 0x422   : > { %2606 = dma.vmem_to_hbm [thread:$0]  (%p2645_p7), %s1847_s8, 1024, %s3555_s26, [#allocation5], %s3110_s1, %s3110_s1, %s3111_s7  }
 0x423   : > { %p2988_p10 = pnand %p2987_p1, %p2981_p3 }
 0x425   : > { %2991 = shalt.err (!%p2988_p10)
}
 0x426   : > { %s3556_s21 = sld [smem:[#allocation32_spill]]  ;;  %s3114_s22 = smov [#allocation16]  }
 0x427   : > { %s1893_s16 = sshll.u32 %s3114_s22, 4  ;;  %s1894_s16 = int_to_ptr.vmem [resolvable:$true] %s1893_s16 }
 0x428   : > { %s3002_s30 = scalar_lea.vmem %s1894_s16, 1024  ;;  %p3009_p2 = scmp.lt.s32.totalorder %s1894_s16, %s1894_s16 }
 0x429   : > { %p3003_p5 = scmp.ne.s32.totalorder %s1894_s16, %s3002_s30  ;;  %p3010_p6 = scmp.lt.s32.totalorder %s3002_s30, %s3002_s30 }
 0x42b   : > { %p3004_p8 = pnand %p3003_p5, %p2645_p7  ;;  %p3011_p13 = por %p3010_p6, %p3009_p2 }
 0x42c   : > { %2610 = dma.vmem_to_hbm [thread:$0]  (%p2645_p7), %s1878_s20, 1024, %s3556_s21, [#allocation14], %s3110_s1, %s3110_s1, %s3111_s7  }
 0x42d   : > { %p3005_p12 = pneg %p3004_p8 }
 0x42f   : > { %p3012_p9 = pnand %p3011_p13, %p3005_p12 }
 0x431   : > { %3015 = shalt.err (!%p3012_p9)
}
 0x432   : > { %s3557_s23 = sld [smem:[#allocation33_spill]] }
 0x438   : > { %2612 = dma.vmem_to_hbm [thread:$0]  (%p2645_p7), %s1894_s16, 1024, %s3557_s23, [#allocation17], %s3110_s1, %s3110_s1, %s3111_s7  }
 0x439   : > { %3063 = dma.done.wait (%p2645_p7), [#allocation5], 1024  }
 0x43a   : > { %3065 = vsyncadd (%p2645_p7), [#allocation5], 4294966272 }
 0x43b   : > { %3067 = dma.done.wait (%p2645_p7), [#allocation14], 2048  }
 0x43c   : > { %3069 = vsyncadd (%p2645_p7), [#allocation14], 4294965248 }
 0x43d   : > { %3071 = dma.done.wait (%p2645_p7), [#allocation17], 1024  }
 0x43e   : > { %3073 = vsyncadd (%p2645_p7), [#allocation17], 4294966272 }
 0x43f PF: > { %s29_s18 = sadd.s32 1, %s3096_s18   ;;  %s3558_s1 = sld [smem:[#allocation24_spill]] }
 0x440   : > { %p26_p4 = scmp.ge.s32.totalorder %s29_s18, 5   ;;  %s3559_s15 = sld [smem:[#allocation26_spill]] }
 0x441   : > { %s3560_s7 = sld [smem:[#allocation25_spill]]  ;;  %s3561_s13 = smov %s3080_s14 }
 0x442   : > { %s3563_s16 = smov %s3092_s17 }
 0x443   :  { %28 = sbr.rel (!%p26_p4) target bundleno = 17 (0x11), region = 146 }
 0x445   : > { %s3562_s14 = smov %s3558_s1 }
 0x447   : > { %s3564_s17 = smov %s3560_s7 }
 0x448   :  { %1921 = vsyncpa [#allocation4], 1 }
 0x449   :  { %1923 = vsyncpa [#allocation4 + $0x1], 1 }
 0x44a   :  { %1924 = vsyncpa [#allocation7], 1 }
 0x44b   :  { %1926 = vsyncpa [#allocation7 + $0x1], 1 }
 0x44c   :  { %1927 = vsyncpa [#allocation10], 1 }
 0x44d   :  { %1928 = vsyncpa [#allocation5], 1 }
 0x44e   :  { %1930 = vsyncpa [#allocation5 + $0x1], 1 }
 0x44f   :  { %1931 = vsyncpa [#allocation14], 1 }
 0x450   :  { %1932 = vsyncpa [#allocation17], 1 }

</bundles_post_ra>
